<compile_context>
chip_gen: v5e
topology: v5e:2x2
jax: 0.10.0
libtpu: 0.0.40
codegen_flags: <defaults>
</compile_context>

<pallas_src>
import numpy as np

import jax
import jax.numpy as jnp
from jax.experimental import pallas as pl
from jax.experimental.pallas import tpu as pltpu

# ----------------------------- configuration --------------------------------
N_PRIM = 3           # len(PRIMITIVES_attention)  (synthetic)
N_ACT = 4            # identity / relu / sigmoid / tanh
OP_PER_CELL = 2      # number of MixedOp_attn blocks in the cell
MAX_TILE_P = 512     # pixel (lane) tile cap; multiple of 128


def _round_up(v, m):
    return (v + m - 1) // m * m


# ------------------------------- Pallas kernel ------------------------------
def _mixact(z, a_ref, op_idx):
    """Mixed activation; a_ref holds per-channel-block weights, shape (OP*N_ACT, NC, 1)."""
    base = op_idx * N_ACT
    a_id = a_ref[base + 0]        # (NC, 1) -> lane-broadcast against (NC, tile_p)
    a_relu = a_ref[base + 1]
    a_sig = a_ref[base + 2]
    a_tanh = a_ref[base + 3]
    t = jnp.tanh(z)
    s = 0.5 * (jnp.tanh(0.5 * z) + 1.0)      # sigmoid via tanh: one EUP op
    return a_id * z + a_relu * jnp.maximum(z, 0.0) + a_sig * s + a_tanh * t


def _cell_kernel(x_ref, w1_ref, b1_ref, a1_ref, w2_ref, b2_ref, a2_ref,
                 s1_ref, s2_ref, o_ref):
    """Entire Cell_attn forward on one (C, tile_p) pixel tile."""
    x = x_ref[...]                                    # (C, tile_p)
    out = x
    for op_idx in range(OP_PER_CELL):                 # unrolled
        # level-1 primitives, concatenated: (NC, C) @ (C, tile_p)
        z1 = jnp.dot(w1_ref[op_idx], out,
                     preferred_element_type=jnp.float32) + b1_ref[op_idx]
        y1 = _mixact(z1, a1_ref, op_idx)              # (NC, tile_p)
        # level-2 primitives with alpha_levels folded in: (NC, NC) @ (NC, tile_p)
        z2 = jnp.dot(w2_ref[op_idx], y1,
                     preferred_element_type=jnp.float32) + b2_ref[op_idx]
        y2 = _mixact(z2, a2_ref, op_idx)              # (NC, tile_p)
        # sink combination: (C, NC) @ (NC, tile_p)
        out = (jnp.dot(s1_ref[op_idx], y1, preferred_element_type=jnp.float32)
               + jnp.dot(s2_ref[op_idx], y2, preferred_element_type=jnp.float32))
    o_ref[...] = (out * 0.2 + x).astype(o_ref.dtype)  # residual (lane-dense store)


# --------------------- fold architecture weights into matmuls ----------------
def _build_fused_params(W_l1, b_l1, W_l2, b_l2, alpha_levels, alpha_sink, alpha_acts):
    OP, N, C, _ = W_l1.shape
    NC = N * C
    # level-1:  Z1 = W1T @ X + b1T        W1T[o, j*C+d, c] = W_l1[o, j, c, d]
    w1T = jnp.transpose(W_l1, (0, 1, 3, 2)).reshape(OP, NC, C)
    b1T = b_l1[:, :, 0, :].reshape(OP, NC, 1)
    # level-2 with alpha_levels folded:   W2fT[o, i*C+d, j*C+c] = aL[o,i,j]*W_l2[o,i,c,d]
    w2fT = jnp.einsum('oij,oicd->oidjc', alpha_levels, W_l2).reshape(OP, NC, NC)
    b2T = b_l2[:, :, 0, :].reshape(OP, NC, 1)
    # sink combination as matmuls:  out = S1T @ Y1 + S2T @ Y2
    eye = jnp.eye(C, dtype=W_l1.dtype)
    s1T = jnp.einsum('ok,cd->ockd', alpha_sink[:, N:], eye).reshape(OP, C, NC)
    s2T = jnp.einsum('oi,cd->ocid', alpha_sink[:, :N], eye).reshape(OP, C, NC)
    # per-primitive-block activation weights, (OP*N_ACT, NC, 1)
    a1 = jnp.transpose(jnp.repeat(alpha_acts[:, :N, :], C, axis=1),
                       (0, 2, 1)).reshape(OP * N_ACT, NC, 1)
    a2 = jnp.transpose(jnp.repeat(alpha_acts[:, N:, :], C, axis=1),
                       (0, 2, 1)).reshape(OP * N_ACT, NC, 1)
    return w1T, b1T, a1, w2fT, b2T, a2, s1T, s2T


# ----------------------------- Cell_attn forward -----------------------------
@jax.jit
def cell_attn_forward(x_nchw, W_l1, b_l1, W_l2, b_l2,
                      alpha_levels, alpha_sink, alpha_acts):
    """x_nchw: (B, C, H, W). Returns (B, C, H, W)."""
    B, C, H, Wd = x_nchw.shape
    N = N_PRIM
    NC = N * C
    OP = OP_PER_CELL
    P = B * H * Wd

    w1T, b1T, a1, w2fT, b2T, a2, s1T, s2T = _build_fused_params(
        W_l1, b_l1, W_l2, b_l2, alpha_levels, alpha_sink, alpha_acts)

    # channels-first: pixels on the lane axis
    x_cf = jnp.transpose(x_nchw, (1, 0, 2, 3)).reshape(C, P)

    # pick the largest lane tile (multiple of 128, <= MAX_TILE_P) dividing padded P
    P128 = _round_up(P, 128)
    tile_p = 128
    for cand in range(128, min(MAX_TILE_P, P128) + 1, 128):
        if P128 % cand == 0:
            tile_p = cand
    P_pad = P128
    if P_pad != P:
        x_cf = jnp.pad(x_cf, ((0, 0), (0, P_pad - P)))
    n_tiles = P_pad // tile_p

    # advisory cost estimate (matmul flops + 2 tanh per z element)
    flops = 2 * P_pad * OP * (NC * C + NC * NC + 2 * C * NC)
    transc = 2 * P_pad * OP * 2 * NC
    param_bytes = 4 * OP * (NC * C + NC + N_ACT * NC + NC * NC + NC + N_ACT * NC + 2 * C * NC)
    bytes_acc = 4 * 2 * C * P_pad + param_bytes

    out_cf = pl.pallas_call(
        _cell_kernel,
        out_shape=jax.ShapeDtypeStruct((C, P_pad), jnp.float32),
        grid_spec=pltpu.PrefetchScalarGridSpec(
            num_scalar_prefetch=0,
            grid=(n_tiles,),
            in_specs=[
                pl.BlockSpec((C, tile_p), lambda p: (0, p)),          # x tile
                pl.BlockSpec((OP, NC, C), lambda p: (0, 0, 0)),       # W1cat^T
                pl.BlockSpec((OP, NC, 1), lambda p: (0, 0, 0)),       # b1
                pl.BlockSpec((OP * N_ACT, NC, 1), lambda p: (0, 0, 0)),  # act w l1
                pl.BlockSpec((OP, NC, NC), lambda p: (0, 0, 0)),      # W2 fused
                pl.BlockSpec((OP, NC, 1), lambda p: (0, 0, 0)),       # b2
                pl.BlockSpec((OP * N_ACT, NC, 1), lambda p: (0, 0, 0)),  # act w l2
                pl.BlockSpec((OP, C, NC), lambda p: (0, 0, 0)),       # sink (y1)
                pl.BlockSpec((OP, C, NC), lambda p: (0, 0, 0)),       # sink (y2)
            ],
            out_specs=pl.BlockSpec((C, tile_p), lambda p: (0, p)),
        ),
        compiler_params=pltpu.CompilerParams(
            dimension_semantics=("parallel",)),
        cost_estimate=pl.CostEstimate(
            flops=flops, transcendentals=transc, bytes_accessed=bytes_acc),
    )(x_cf, w1T, b1T, a1, w2fT, b2T, a2, s1T, s2T)

    out_cf = out_cf[:, :P]
    return jnp.transpose(out_cf.reshape(C, B, H, Wd), (1, 0, 2, 3))


# --------------------------- pure-JAX reference ------------------------------
def _prim_ref(x, W, b, aw):
    z = x @ W + b
    return (aw[0] * z + aw[1] * jnp.maximum(z, 0.0)
            + aw[2] * jax.nn.sigmoid(z) + aw[3] * jnp.tanh(z))


def _mixed_op_ref(x, W_l1, b_l1, W_l2, b_l2, alpha_levels, alpha_sink, alpha_acts):
    N = N_PRIM
    acts1, acts2 = alpha_acts[:N], alpha_acts[N:]
    y1 = [_prim_ref(x, W_l1[j], b_l1[j, 0], acts1[j]) for j in range(N)]
    res_final = jnp.zeros_like(x)
    for i in range(N):
        res = sum(y1[j] * alpha_levels[i, j] for j in range(N))
        res_final = res_final + _prim_ref(res, W_l2[i], b_l2[i, 0], acts2[i]) * alpha_sink[i]
    for k in range(N):
        res_final = res_final + alpha_sink[k + N] * y1[k]
    return res_final


def cell_attn_ref(x_nchw, W_l1, b_l1, W_l2, b_l2, alpha_levels, alpha_sink, alpha_acts):
    B, C, H, Wd = x_nchw.shape
    x_flat = jnp.transpose(x_nchw, (0, 2, 3, 1)).reshape(B * H * Wd, C)
    out = x_flat
    for i in range(OP_PER_CELL):
        out = _mixed_op_ref(out, W_l1[i], b_l1[i], W_l2[i], b_l2[i],
                            alpha_levels[i], alpha_sink[i], alpha_acts[i])
    out = out * 0.2 + x_flat
    return jnp.transpose(out.reshape(B, H, Wd, C), (0, 3, 1, 2))


# ------------------------------------ main ------------------------------------
if __name__ == "__main__":
    # small shapes consistent with the module: batch=2, channels=8, spatial=16x16
    B, C, H, Wd = 2, 8, 16, 16

    key = jax.random.PRNGKey(0)
    k_x, k_w1, k_b1, k_w2, k_b2, k_al, k_as, k_aa = jax.random.split(key, 8)

    x = jax.random.normal(k_x, (B, C, H, Wd), dtype=jnp.float32)

    # deterministic synthetic parameters for each MixedOp / level / primitive
    W_l1 = 0.3 * jax.random.normal(k_w1, (OP_PER_CELL, N_PRIM, C, C), jnp.float32)
    b_l1 = 0.1 * jax.random.normal(k_b1, (OP_PER_CELL, N_PRIM, 1, C), jnp.float32)
    W_l2 = 0.3 * jax.random.normal(k_w2, (OP_PER_CELL, N_PRIM, C, C), jnp.float32)
    b_l2 = 0.1 * jax.random.normal(k_b2, (OP_PER_CELL, N_PRIM, 1, C), jnp.float32)

    # architecture weights (raw, as in the PyTorch forward)
    alpha_levels = jax.nn.softmax(
        jax.random.normal(k_al, (OP_PER_CELL, N_PRIM, N_PRIM), jnp.float32), axis=-1)
    alpha_sink = jax.nn.softmax(
        jax.random.normal(k_as, (OP_PER_CELL, 2 * N_PRIM), jnp.float32), axis=-1)
    alpha_acts = jax.nn.softmax(
        jax.random.normal(k_aa, (OP_PER_CELL, 2 * N_PRIM, N_ACT), jnp.float32), axis=-1)

    out = cell_attn_forward(x, W_l1, b_l1, W_l2, b_l2,
                            alpha_levels, alpha_sink, alpha_acts)
    out = jax.block_until_ready(out)

    ref = cell_attn_ref(x, W_l1, b_l1, W_l2, b_l2,
                        alpha_levels, alpha_sink, alpha_acts)
    ref = jax.block_until_ready(ref)

    assert out.shape == (B, C, H, Wd)
    np.testing.assert_allclose(np.asarray(out), np.asarray(ref), rtol=2e-4, atol=2e-4)
    print("KERNEL_OK")
</pallas_src>

<mosaic_0001>
module attributes {stable_mosaic.version = 11 : i64} {
  func.func @_cell_kernel(%arg0: i32, %arg1: memref<8x512xf32, #tpu.memory_space<vmem>>, %arg2: memref<2x24x8xf32, #tpu.memory_space<vmem>>, %arg3: memref<2x24x1xf32, #tpu.memory_space<vmem>>, %arg4: memref<8x24x1xf32, #tpu.memory_space<vmem>>, %arg5: memref<2x24x24xf32, #tpu.memory_space<vmem>>, %arg6: memref<2x24x1xf32, #tpu.memory_space<vmem>>, %arg7: memref<8x24x1xf32, #tpu.memory_space<vmem>>, %arg8: memref<2x8x24xf32, #tpu.memory_space<vmem>>, %arg9: memref<2x8x24xf32, #tpu.memory_space<vmem>>, %arg10: memref<8x512xf32, #tpu.memory_space<vmem>>) attributes {dimension_semantics = [#tpu.dimension_semantics<parallel>], iteration_bounds = array<i64: 1>, scalar_prefetch = 0 : i64, scratch_operands = 0 : i64, tpu.core_type = #tpu.core_type<tc>, window_params = [{transform_indices = @transform_0, window_bounds = array<i64: 8, 512>}, {pipeline_mode = #tpu.pipeline_mode<synchronous>, transform_indices = @transform_1, window_bounds = array<i64: 2, 24, 8>}, {pipeline_mode = #tpu.pipeline_mode<synchronous>, transform_indices = @transform_2, window_bounds = array<i64: 2, 24, 1>}, {pipeline_mode = #tpu.pipeline_mode<synchronous>, transform_indices = @transform_3, window_bounds = array<i64: 8, 24, 1>}, {pipeline_mode = #tpu.pipeline_mode<synchronous>, transform_indices = @transform_4, window_bounds = array<i64: 2, 24, 24>}, {pipeline_mode = #tpu.pipeline_mode<synchronous>, transform_indices = @transform_5, window_bounds = array<i64: 2, 24, 1>}, {pipeline_mode = #tpu.pipeline_mode<synchronous>, transform_indices = @transform_6, window_bounds = array<i64: 8, 24, 1>}, {pipeline_mode = #tpu.pipeline_mode<synchronous>, transform_indices = @transform_7, window_bounds = array<i64: 2, 8, 24>}, {pipeline_mode = #tpu.pipeline_mode<synchronous>, transform_indices = @transform_8, window_bounds = array<i64: 2, 8, 24>}, {transform_indices = @transform_9, window_bounds = array<i64: 8, 512>}]} {
    %c0 = arith.constant 0 : index
    %c0_0 = arith.constant 0 : index
    %0 = vector.load %arg1[%c0, %c0_0] : memref<8x512xf32, #tpu.memory_space<vmem>>, vector<8x512xf32>
    %c0_1 = arith.constant 0 : index
    %c0_2 = arith.constant 0 : index
    %c0_3 = arith.constant 0 : index
    %1 = vector.load %arg2[%c0_1, %c0_2, %c0_3] : memref<2x24x8xf32, #tpu.memory_space<vmem>>, vector<1x24x8xf32>
    %2 = vector.shape_cast %1 : vector<1x24x8xf32> to vector<24x8xf32>
    %cst = arith.constant dense<0.000000e+00> : vector<24x512xf32>
    %3 = tpu.matmul %2, %0, %cst {dimension_numbers = #tpu.dot_dimension_numbers<[1], [0], [0], [1], [0, 0, 1, 1], [], []>} : vector<24x8xf32>, vector<8x512xf32>, vector<24x512xf32> -> vector<24x512xf32>
    %c0_4 = arith.constant 0 : index
    %c0_5 = arith.constant 0 : index
    %c0_6 = arith.constant 0 : index
    %4 = vector.load %arg3[%c0_4, %c0_5, %c0_6] : memref<2x24x1xf32, #tpu.memory_space<vmem>>, vector<1x24x1xf32>
    %5 = vector.shape_cast %4 : vector<1x24x1xf32> to vector<24x1xf32>
    %6 = vector.broadcast %5 : vector<24x1xf32> to vector<24x512xf32>
    %7 = arith.addf %3, %6 : vector<24x512xf32>
    %c0_7 = arith.constant 0 : index
    %c0_8 = arith.constant 0 : index
    %c0_9 = arith.constant 0 : index
    %8 = vector.load %arg4[%c0_7, %c0_8, %c0_9] : memref<8x24x1xf32, #tpu.memory_space<vmem>>, vector<1x24x1xf32>
    %9 = vector.shape_cast %8 : vector<1x24x1xf32> to vector<24x1xf32>
    %c1 = arith.constant 1 : index
    %c0_10 = arith.constant 0 : index
    %c0_11 = arith.constant 0 : index
    %10 = vector.load %arg4[%c1, %c0_10, %c0_11] : memref<8x24x1xf32, #tpu.memory_space<vmem>>, vector<1x24x1xf32>
    %11 = vector.shape_cast %10 : vector<1x24x1xf32> to vector<24x1xf32>
    %c2 = arith.constant 2 : index
    %c0_12 = arith.constant 0 : index
    %c0_13 = arith.constant 0 : index
    %12 = vector.load %arg4[%c2, %c0_12, %c0_13] : memref<8x24x1xf32, #tpu.memory_space<vmem>>, vector<1x24x1xf32>
    %13 = vector.shape_cast %12 : vector<1x24x1xf32> to vector<24x1xf32>
    %c3 = arith.constant 3 : index
    %c0_14 = arith.constant 0 : index
    %c0_15 = arith.constant 0 : index
    %14 = vector.load %arg4[%c3, %c0_14, %c0_15] : memref<8x24x1xf32, #tpu.memory_space<vmem>>, vector<1x24x1xf32>
    %15 = vector.shape_cast %14 : vector<1x24x1xf32> to vector<24x1xf32>
    %16 = math.tanh %7 : vector<24x512xf32>
    %cst_16 = arith.constant 5.000000e-01 : f32
    %17 = vector.broadcast %cst_16 : f32 to vector<24x512xf32>
    %18 = arith.mulf %17, %7 : vector<24x512xf32>
    %19 = math.tanh %18 : vector<24x512xf32>
    %cst_17 = arith.constant 1.000000e+00 : f32
    %20 = vector.broadcast %cst_17 : f32 to vector<24x512xf32>
    %21 = arith.addf %19, %20 : vector<24x512xf32>
    %cst_18 = arith.constant 5.000000e-01 : f32
    %22 = vector.broadcast %cst_18 : f32 to vector<24x512xf32>
    %23 = arith.mulf %22, %21 : vector<24x512xf32>
    %24 = vector.broadcast %9 : vector<24x1xf32> to vector<24x512xf32>
    %25 = arith.mulf %24, %7 : vector<24x512xf32>
    %cst_19 = arith.constant 0.000000e+00 : f32
    %26 = vector.broadcast %cst_19 : f32 to vector<24x512xf32>
    %27 = arith.maximumf %7, %26 : vector<24x512xf32>
    %28 = vector.broadcast %11 : vector<24x1xf32> to vector<24x512xf32>
    %29 = arith.mulf %28, %27 : vector<24x512xf32>
    %30 = arith.addf %25, %29 : vector<24x512xf32>
    %31 = vector.broadcast %13 : vector<24x1xf32> to vector<24x512xf32>
    %32 = arith.mulf %31, %23 : vector<24x512xf32>
    %33 = arith.addf %30, %32 : vector<24x512xf32>
    %34 = vector.broadcast %15 : vector<24x1xf32> to vector<24x512xf32>
    %35 = arith.mulf %34, %16 : vector<24x512xf32>
    %36 = arith.addf %33, %35 : vector<24x512xf32>
    %c0_20 = arith.constant 0 : index
    %c0_21 = arith.constant 0 : index
    %c0_22 = arith.constant 0 : index
    %37 = vector.load %arg5[%c0_20, %c0_21, %c0_22] : memref<2x24x24xf32, #tpu.memory_space<vmem>>, vector<1x24x24xf32>
    %38 = vector.shape_cast %37 : vector<1x24x24xf32> to vector<24x24xf32>
    %cst_23 = arith.constant dense<0.000000e+00> : vector<24x512xf32>
    %39 = tpu.matmul %38, %36, %cst_23 {dimension_numbers = #tpu.dot_dimension_numbers<[1], [0], [0], [1], [0, 0, 1, 1], [], []>} : vector<24x24xf32>, vector<24x512xf32>, vector<24x512xf32> -> vector<24x512xf32>
    %c0_24 = arith.constant 0 : index
    %c0_25 = arith.constant 0 : index
    %c0_26 = arith.constant 0 : index
    %40 = vector.load %arg6[%c0_24, %c0_25, %c0_26] : memref<2x24x1xf32, #tpu.memory_space<vmem>>, vector<1x24x1xf32>
    %41 = vector.shape_cast %40 : vector<1x24x1xf32> to vector<24x1xf32>
    %42 = vector.broadcast %41 : vector<24x1xf32> to vector<24x512xf32>
    %43 = arith.addf %39, %42 : vector<24x512xf32>
    %c0_27 = arith.constant 0 : index
    %c0_28 = arith.constant 0 : index
    %c0_29 = arith.constant 0 : index
    %44 = vector.load %arg7[%c0_27, %c0_28, %c0_29] : memref<8x24x1xf32, #tpu.memory_space<vmem>>, vector<1x24x1xf32>
    %45 = vector.shape_cast %44 : vector<1x24x1xf32> to vector<24x1xf32>
    %c1_30 = arith.constant 1 : index
    %c0_31 = arith.constant 0 : index
    %c0_32 = arith.constant 0 : index
    %46 = vector.load %arg7[%c1_30, %c0_31, %c0_32] : memref<8x24x1xf32, #tpu.memory_space<vmem>>, vector<1x24x1xf32>
    %47 = vector.shape_cast %46 : vector<1x24x1xf32> to vector<24x1xf32>
    %c2_33 = arith.constant 2 : index
    %c0_34 = arith.constant 0 : index
    %c0_35 = arith.constant 0 : index
    %48 = vector.load %arg7[%c2_33, %c0_34, %c0_35] : memref<8x24x1xf32, #tpu.memory_space<vmem>>, vector<1x24x1xf32>
    %49 = vector.shape_cast %48 : vector<1x24x1xf32> to vector<24x1xf32>
    %c3_36 = arith.constant 3 : index
    %c0_37 = arith.constant 0 : index
    %c0_38 = arith.constant 0 : index
    %50 = vector.load %arg7[%c3_36, %c0_37, %c0_38] : memref<8x24x1xf32, #tpu.memory_space<vmem>>, vector<1x24x1xf32>
    %51 = vector.shape_cast %50 : vector<1x24x1xf32> to vector<24x1xf32>
    %52 = math.tanh %43 : vector<24x512xf32>
    %cst_39 = arith.constant 5.000000e-01 : f32
    %53 = vector.broadcast %cst_39 : f32 to vector<24x512xf32>
    %54 = arith.mulf %53, %43 : vector<24x512xf32>
    %55 = math.tanh %54 : vector<24x512xf32>
    %cst_40 = arith.constant 1.000000e+00 : f32
    %56 = vector.broadcast %cst_40 : f32 to vector<24x512xf32>
    %57 = arith.addf %55, %56 : vector<24x512xf32>
    %cst_41 = arith.constant 5.000000e-01 : f32
    %58 = vector.broadcast %cst_41 : f32 to vector<24x512xf32>
    %59 = arith.mulf %58, %57 : vector<24x512xf32>
    %60 = vector.broadcast %45 : vector<24x1xf32> to vector<24x512xf32>
    %61 = arith.mulf %60, %43 : vector<24x512xf32>
    %cst_42 = arith.constant 0.000000e+00 : f32
    %62 = vector.broadcast %cst_42 : f32 to vector<24x512xf32>
    %63 = arith.maximumf %43, %62 : vector<24x512xf32>
    %64 = vector.broadcast %47 : vector<24x1xf32> to vector<24x512xf32>
    %65 = arith.mulf %64, %63 : vector<24x512xf32>
    %66 = arith.addf %61, %65 : vector<24x512xf32>
    %67 = vector.broadcast %49 : vector<24x1xf32> to vector<24x512xf32>
    %68 = arith.mulf %67, %59 : vector<24x512xf32>
    %69 = arith.addf %66, %68 : vector<24x512xf32>
    %70 = vector.broadcast %51 : vector<24x1xf32> to vector<24x512xf32>
    %71 = arith.mulf %70, %52 : vector<24x512xf32>
    %72 = arith.addf %69, %71 : vector<24x512xf32>
    %c0_43 = arith.constant 0 : index
    %c0_44 = arith.constant 0 : index
    %c0_45 = arith.constant 0 : index
    %73 = vector.load %arg8[%c0_43, %c0_44, %c0_45] : memref<2x8x24xf32, #tpu.memory_space<vmem>>, vector<1x8x24xf32>
    %74 = vector.shape_cast %73 : vector<1x8x24xf32> to vector<8x24xf32>
    %cst_46 = arith.constant dense<0.000000e+00> : vector<8x512xf32>
    %75 = tpu.matmul %74, %36, %cst_46 {dimension_numbers = #tpu.dot_dimension_numbers<[1], [0], [0], [1], [0, 0, 1, 1], [], []>} : vector<8x24xf32>, vector<24x512xf32>, vector<8x512xf32> -> vector<8x512xf32>
    %c0_47 = arith.constant 0 : index
    %c0_48 = arith.constant 0 : index
    %c0_49 = arith.constant 0 : index
    %76 = vector.load %arg9[%c0_47, %c0_48, %c0_49] : memref<2x8x24xf32, #tpu.memory_space<vmem>>, vector<1x8x24xf32>
    %77 = vector.shape_cast %76 : vector<1x8x24xf32> to vector<8x24xf32>
    %cst_50 = arith.constant dense<0.000000e+00> : vector<8x512xf32>
    %78 = tpu.matmul %77, %72, %cst_50 {dimension_numbers = #tpu.dot_dimension_numbers<[1], [0], [0], [1], [0, 0, 1, 1], [], []>} : vector<8x24xf32>, vector<24x512xf32>, vector<8x512xf32> -> vector<8x512xf32>
    %79 = arith.addf %75, %78 : vector<8x512xf32>
    %c1_51 = arith.constant 1 : index
    %c0_52 = arith.constant 0 : index
    %c0_53 = arith.constant 0 : index
    %80 = vector.load %arg2[%c1_51, %c0_52, %c0_53] : memref<2x24x8xf32, #tpu.memory_space<vmem>>, vector<1x24x8xf32>
    %81 = vector.shape_cast %80 : vector<1x24x8xf32> to vector<24x8xf32>
    %cst_54 = arith.constant dense<0.000000e+00> : vector<24x512xf32>
    %82 = tpu.matmul %81, %79, %cst_54 {dimension_numbers = #tpu.dot_dimension_numbers<[1], [0], [0], [1], [0, 0, 1, 1], [], []>} : vector<24x8xf32>, vector<8x512xf32>, vector<24x512xf32> -> vector<24x512xf32>
    %c1_55 = arith.constant 1 : index
    %c0_56 = arith.constant 0 : index
    %c0_57 = arith.constant 0 : index
    %83 = vector.load %arg3[%c1_55, %c0_56, %c0_57] : memref<2x24x1xf32, #tpu.memory_space<vmem>>, vector<1x24x1xf32>
    %84 = vector.shape_cast %83 : vector<1x24x1xf32> to vector<24x1xf32>
    %85 = vector.broadcast %84 : vector<24x1xf32> to vector<24x512xf32>
    %86 = arith.addf %82, %85 : vector<24x512xf32>
    %c4 = arith.constant 4 : index
    %c0_58 = arith.constant 0 : index
    %c0_59 = arith.constant 0 : index
    %87 = vector.load %arg4[%c4, %c0_58, %c0_59] : memref<8x24x1xf32, #tpu.memory_space<vmem>>, vector<1x24x1xf32>
    %88 = vector.shape_cast %87 : vector<1x24x1xf32> to vector<24x1xf32>
    %c5 = arith.constant 5 : index
    %c0_60 = arith.constant 0 : index
    %c0_61 = arith.constant 0 : index
    %89 = vector.load %arg4[%c5, %c0_60, %c0_61] : memref<8x24x1xf32, #tpu.memory_space<vmem>>, vector<1x24x1xf32>
    %90 = vector.shape_cast %89 : vector<1x24x1xf32> to vector<24x1xf32>
    %c6 = arith.constant 6 : index
    %c0_62 = arith.constant 0 : index
    %c0_63 = arith.constant 0 : index
    %91 = vector.load %arg4[%c6, %c0_62, %c0_63] : memref<8x24x1xf32, #tpu.memory_space<vmem>>, vector<1x24x1xf32>
    %92 = vector.shape_cast %91 : vector<1x24x1xf32> to vector<24x1xf32>
    %c7 = arith.constant 7 : index
    %c0_64 = arith.constant 0 : index
    %c0_65 = arith.constant 0 : index
    %93 = vector.load %arg4[%c7, %c0_64, %c0_65] : memref<8x24x1xf32, #tpu.memory_space<vmem>>, vector<1x24x1xf32>
    %94 = vector.shape_cast %93 : vector<1x24x1xf32> to vector<24x1xf32>
    %95 = math.tanh %86 : vector<24x512xf32>
    %cst_66 = arith.constant 5.000000e-01 : f32
    %96 = vector.broadcast %cst_66 : f32 to vector<24x512xf32>
    %97 = arith.mulf %96, %86 : vector<24x512xf32>
    %98 = math.tanh %97 : vector<24x512xf32>
    %cst_67 = arith.constant 1.000000e+00 : f32
    %99 = vector.broadcast %cst_67 : f32 to vector<24x512xf32>
    %100 = arith.addf %98, %99 : vector<24x512xf32>
    %cst_68 = arith.constant 5.000000e-01 : f32
    %101 = vector.broadcast %cst_68 : f32 to vector<24x512xf32>
    %102 = arith.mulf %101, %100 : vector<24x512xf32>
    %103 = vector.broadcast %88 : vector<24x1xf32> to vector<24x512xf32>
    %104 = arith.mulf %103, %86 : vector<24x512xf32>
    %cst_69 = arith.constant 0.000000e+00 : f32
    %105 = vector.broadcast %cst_69 : f32 to vector<24x512xf32>
    %106 = arith.maximumf %86, %105 : vector<24x512xf32>
    %107 = vector.broadcast %90 : vector<24x1xf32> to vector<24x512xf32>
    %108 = arith.mulf %107, %106 : vector<24x512xf32>
    %109 = arith.addf %104, %108 : vector<24x512xf32>
    %110 = vector.broadcast %92 : vector<24x1xf32> to vector<24x512xf32>
    %111 = arith.mulf %110, %102 : vector<24x512xf32>
    %112 = arith.addf %109, %111 : vector<24x512xf32>
    %113 = vector.broadcast %94 : vector<24x1xf32> to vector<24x512xf32>
    %114 = arith.mulf %113, %95 : vector<24x512xf32>
    %115 = arith.addf %112, %114 : vector<24x512xf32>
    %c1_70 = arith.constant 1 : index
    %c0_71 = arith.constant 0 : index
    %c0_72 = arith.constant 0 : index
    %116 = vector.load %arg5[%c1_70, %c0_71, %c0_72] : memref<2x24x24xf32, #tpu.memory_space<vmem>>, vector<1x24x24xf32>
    %117 = vector.shape_cast %116 : vector<1x24x24xf32> to vector<24x24xf32>
    %cst_73 = arith.constant dense<0.000000e+00> : vector<24x512xf32>
    %118 = tpu.matmul %117, %115, %cst_73 {dimension_numbers = #tpu.dot_dimension_numbers<[1], [0], [0], [1], [0, 0, 1, 1], [], []>} : vector<24x24xf32>, vector<24x512xf32>, vector<24x512xf32> -> vector<24x512xf32>
    %c1_74 = arith.constant 1 : index
    %c0_75 = arith.constant 0 : index
    %c0_76 = arith.constant 0 : index
    %119 = vector.load %arg6[%c1_74, %c0_75, %c0_76] : memref<2x24x1xf32, #tpu.memory_space<vmem>>, vector<1x24x1xf32>
    %120 = vector.shape_cast %119 : vector<1x24x1xf32> to vector<24x1xf32>
    %121 = vector.broadcast %120 : vector<24x1xf32> to vector<24x512xf32>
    %122 = arith.addf %118, %121 : vector<24x512xf32>
    %c4_77 = arith.constant 4 : index
    %c0_78 = arith.constant 0 : index
    %c0_79 = arith.constant 0 : index
    %123 = vector.load %arg7[%c4_77, %c0_78, %c0_79] : memref<8x24x1xf32, #tpu.memory_space<vmem>>, vector<1x24x1xf32>
    %124 = vector.shape_cast %123 : vector<1x24x1xf32> to vector<24x1xf32>
    %c5_80 = arith.constant 5 : index
    %c0_81 = arith.constant 0 : index
    %c0_82 = arith.constant 0 : index
    %125 = vector.load %arg7[%c5_80, %c0_81, %c0_82] : memref<8x24x1xf32, #tpu.memory_space<vmem>>, vector<1x24x1xf32>
    %126 = vector.shape_cast %125 : vector<1x24x1xf32> to vector<24x1xf32>
    %c6_83 = arith.constant 6 : index
    %c0_84 = arith.constant 0 : index
    %c0_85 = arith.constant 0 : index
    %127 = vector.load %arg7[%c6_83, %c0_84, %c0_85] : memref<8x24x1xf32, #tpu.memory_space<vmem>>, vector<1x24x1xf32>
    %128 = vector.shape_cast %127 : vector<1x24x1xf32> to vector<24x1xf32>
    %c7_86 = arith.constant 7 : index
    %c0_87 = arith.constant 0 : index
    %c0_88 = arith.constant 0 : index
    %129 = vector.load %arg7[%c7_86, %c0_87, %c0_88] : memref<8x24x1xf32, #tpu.memory_space<vmem>>, vector<1x24x1xf32>
    %130 = vector.shape_cast %129 : vector<1x24x1xf32> to vector<24x1xf32>
    %131 = math.tanh %122 : vector<24x512xf32>
    %cst_89 = arith.constant 5.000000e-01 : f32
    %132 = vector.broadcast %cst_89 : f32 to vector<24x512xf32>
    %133 = arith.mulf %132, %122 : vector<24x512xf32>
    %134 = math.tanh %133 : vector<24x512xf32>
    %cst_90 = arith.constant 1.000000e+00 : f32
    %135 = vector.broadcast %cst_90 : f32 to vector<24x512xf32>
    %136 = arith.addf %134, %135 : vector<24x512xf32>
    %cst_91 = arith.constant 5.000000e-01 : f32
    %137 = vector.broadcast %cst_91 : f32 to vector<24x512xf32>
    %138 = arith.mulf %137, %136 : vector<24x512xf32>
    %139 = vector.broadcast %124 : vector<24x1xf32> to vector<24x512xf32>
    %140 = arith.mulf %139, %122 : vector<24x512xf32>
    %cst_92 = arith.constant 0.000000e+00 : f32
    %141 = vector.broadcast %cst_92 : f32 to vector<24x512xf32>
    %142 = arith.maximumf %122, %141 : vector<24x512xf32>
    %143 = vector.broadcast %126 : vector<24x1xf32> to vector<24x512xf32>
    %144 = arith.mulf %143, %142 : vector<24x512xf32>
    %145 = arith.addf %140, %144 : vector<24x512xf32>
    %146 = vector.broadcast %128 : vector<24x1xf32> to vector<24x512xf32>
    %147 = arith.mulf %146, %138 : vector<24x512xf32>
    %148 = arith.addf %145, %147 : vector<24x512xf32>
    %149 = vector.broadcast %130 : vector<24x1xf32> to vector<24x512xf32>
    %150 = arith.mulf %149, %131 : vector<24x512xf32>
    %151 = arith.addf %148, %150 : vector<24x512xf32>
    %c1_93 = arith.constant 1 : index
    %c0_94 = arith.constant 0 : index
    %c0_95 = arith.constant 0 : index
    %152 = vector.load %arg8[%c1_93, %c0_94, %c0_95] : memref<2x8x24xf32, #tpu.memory_space<vmem>>, vector<1x8x24xf32>
    %153 = vector.shape_cast %152 : vector<1x8x24xf32> to vector<8x24xf32>
    %cst_96 = arith.constant dense<0.000000e+00> : vector<8x512xf32>
    %154 = tpu.matmul %153, %115, %cst_96 {dimension_numbers = #tpu.dot_dimension_numbers<[1], [0], [0], [1], [0, 0, 1, 1], [], []>} : vector<8x24xf32>, vector<24x512xf32>, vector<8x512xf32> -> vector<8x512xf32>
    %c1_97 = arith.constant 1 : index
    %c0_98 = arith.constant 0 : index
    %c0_99 = arith.constant 0 : index
    %155 = vector.load %arg9[%c1_97, %c0_98, %c0_99] : memref<2x8x24xf32, #tpu.memory_space<vmem>>, vector<1x8x24xf32>
    %156 = vector.shape_cast %155 : vector<1x8x24xf32> to vector<8x24xf32>
    %cst_100 = arith.constant dense<0.000000e+00> : vector<8x512xf32>
    %157 = tpu.matmul %156, %151, %cst_100 {dimension_numbers = #tpu.dot_dimension_numbers<[1], [0], [0], [1], [0, 0, 1, 1], [], []>} : vector<8x24xf32>, vector<24x512xf32>, vector<8x512xf32> -> vector<8x512xf32>
    %158 = arith.addf %154, %157 : vector<8x512xf32>
    %cst_101 = arith.constant 2.000000e-01 : f32
    %159 = vector.broadcast %cst_101 : f32 to vector<8x512xf32>
    %160 = arith.mulf %158, %159 : vector<8x512xf32>
    %161 = arith.addf %160, %0 : vector<8x512xf32>
    %c0_102 = arith.constant 0 : index
    %c0_103 = arith.constant 0 : index
    %162 = vector.load %arg10[%c0_102, %c0_103] : memref<8x512xf32, #tpu.memory_space<vmem>>, vector<8x512xf32>
    tpu.vector_store %arg10[%c0_102, %c0_103], %161 {strides = array<i32>} : memref<8x512xf32, #tpu.memory_space<vmem>>, vector<8x512xf32>,
    return
  }
  func.func @transform_0(%arg0: i32) -> (i32, i32) {
    %c0_i32 = arith.constant 0 : i32
    %c0_i32_0 = arith.constant 0 : i32
    return %c0_i32, %arg0 : i32, i32
  }
  func.func @transform_1(%arg0: i32) -> (i32, i32, i32) {
    %c0_i32 = arith.constant 0 : i32
    %c0_i32_0 = arith.constant 0 : i32
    %c0_i32_1 = arith.constant 0 : i32
    %c0_i32_2 = arith.constant 0 : i32
    return %c0_i32, %c0_i32_0, %c0_i32_1 : i32, i32, i32
  }
  func.func @transform_2(%arg0: i32) -> (i32, i32, i32) {
    %c0_i32 = arith.constant 0 : i32
    %c0_i32_0 = arith.constant 0 : i32
    %c0_i32_1 = arith.constant 0 : i32
    %c0_i32_2 = arith.constant 0 : i32
    return %c0_i32, %c0_i32_0, %c0_i32_1 : i32, i32, i32
  }
  func.func @transform_3(%arg0: i32) -> (i32, i32, i32) {
    %c0_i32 = arith.constant 0 : i32
    %c0_i32_0 = arith.constant 0 : i32
    %c0_i32_1 = arith.constant 0 : i32
    %c0_i32_2 = arith.constant 0 : i32
    return %c0_i32, %c0_i32_0, %c0_i32_1 : i32, i32, i32
  }
  func.func @transform_4(%arg0: i32) -> (i32, i32, i32) {
    %c0_i32 = arith.constant 0 : i32
    %c0_i32_0 = arith.constant 0 : i32
    %c0_i32_1 = arith.constant 0 : i32
    %c0_i32_2 = arith.constant 0 : i32
    return %c0_i32, %c0_i32_0, %c0_i32_1 : i32, i32, i32
  }
  func.func @transform_5(%arg0: i32) -> (i32, i32, i32) {
    %c0_i32 = arith.constant 0 : i32
    %c0_i32_0 = arith.constant 0 : i32
    %c0_i32_1 = arith.constant 0 : i32
    %c0_i32_2 = arith.constant 0 : i32
    return %c0_i32, %c0_i32_0, %c0_i32_1 : i32, i32, i32
  }
  func.func @transform_6(%arg0: i32) -> (i32, i32, i32) {
    %c0_i32 = arith.constant 0 : i32
    %c0_i32_0 = arith.constant 0 : i32
    %c0_i32_1 = arith.constant 0 : i32
    %c0_i32_2 = arith.constant 0 : i32
    return %c0_i32, %c0_i32_0, %c0_i32_1 : i32, i32, i32
  }
  func.func @transform_7(%arg0: i32) -> (i32, i32, i32) {
    %c0_i32 = arith.constant 0 : i32
    %c0_i32_0 = arith.constant 0 : i32
    %c0_i32_1 = arith.constant 0 : i32
    %c0_i32_2 = arith.constant 0 : i32
    return %c0_i32, %c0_i32_0, %c0_i32_1 : i32, i32, i32
  }
  func.func @transform_8(%arg0: i32) -> (i32, i32, i32) {
    %c0_i32 = arith.constant 0 : i32
    %c0_i32_0 = arith.constant 0 : i32
    %c0_i32_1 = arith.constant 0 : i32
    %c0_i32_2 = arith.constant 0 : i32
    return %c0_i32, %c0_i32_0, %c0_i32_1 : i32, i32, i32
  }
  func.func @transform_9(%arg0: i32) -> (i32, i32) {
    %c0_i32 = arith.constant 0 : i32
    %c0_i32_0 = arith.constant 0 : i32
    return %c0_i32, %arg0 : i32, i32
  }
}

</mosaic_0001>

<bundles_post_ra>
// kernel: squeeze.0
= control target key start
LH: loop header
LB: loop body
LE: loop exit
PB: predicated region body
PF: predicated region fallthrough
CT: control target
= control target key end

     0   :  { %vm11_vm0 = vcmask 7168   ;;  %s98_s12 = smov 125   ;;  %s99_s15 = smov 123   ;;  %s184_s0 = inlined_call_operand.vmem [shape: f32[2,3,8], index: 0, kind: input, shape index: {}]   ;;  %s185_s1 = inlined_call_operand.vmem [shape: f32[2,24,1], index: 1, kind: output, shape index: {}]  }
   0x1   :  { %v74_v0 = vld [vmem:[%s184_s0 + $0x4] sm:$0xf]  ;;  %v8_v1 = vld [vmem:[%s184_s0] sm:$0xf]  ;;  %s97_s0 = smov 127   ;;  %s100_s16 = smov 126  }
   0x2   :  { %7 = vst [vmem:[#allocation0 + $0x8] sm:$0xf] %v74_v0  ;;  %s101_s17 = smov 124   ;;  %s102_s18 = smov 122  }
   0x3   :  { %9 = vst [vmem:[#allocation0] sm:$0xf] %v8_v1  ;;  %s103_s19 = smov 121  }
   0x9   :  { %v14_v2 = vld [vmem:[#allocation0 + $0x8] sm:$0x7]  }
   0xa   :  { %v18_v3 = vld.sshfl [vmem:[#allocation0] sm:$0xff pattern:$0xaaa98210]   ;;  %75 = vst.msk [vmem:[%s185_s1 + $0x18] ss:$8 sm:$0x7] %vm11_vm0, %v14_v2  }
   0xb   :  { %v10_v4 = vld [vmem:[#allocation0] sm:$0x7]   ;;  %19 = vrot.lane.b32.xlu0 %v18_v3, %s97_s0  ;;  %35 = vrot.lane.b32.xlu1 %v18_v3, %s98_s12 }
   0xc   :  { %12 = vst.msk [vmem:[%s185_s1] ss:$8 sm:$0x7] %vm11_vm0, %v10_v4   ;;  %51 = vrot.lane.b32.xlu2 %v18_v3, %s99_s15 }
  0x13   :  { %27 = vrot.lane.b32.xlu0 %v18_v3, %s100_s16  ;;  %43 = vrot.lane.b32.xlu1 %v18_v3, %s101_s17 }
  0x14   :  { %59 = vrot.lane.b32.xlu2 %v18_v3, %s102_s18 }
  0x1b   :  { %67 = vrot.lane.b32.xlu0 %v18_v3, %s103_s19 }
  0x66   :  { %v52_v5 = vpop.permute.xlu2 %51  }
  0x67   :  { %84 = vst.msk [vmem:[%s185_s1 + $0x5] ss:$8 sm:$0xf] %vm11_vm0, %v52_v5  }
  0x68   :  { %85 = vst.msk [vmem:[%s185_s1 + $0x5] ss:$8 sm:$0x30] %vm11_vm0, %v52_v5  }
  0x6e   :  { %v60_v6 = vpop.permute.xlu2 %59  }
  0x6f   :  { %86 = vst.msk [vmem:[%s185_s1 + $0x6] ss:$8 sm:$0xf] %vm11_vm0, %v60_v6  }
  0x70   :  { %87 = vst.msk [vmem:[%s185_s1 + $0x6] ss:$8 sm:$0x30] %vm11_vm0, %v60_v6  }
  0x7d   :  { %v20_v7 = vpop.permute.xlu0 %19   ;;  %v36_v8 = vpop.permute.xlu1 %35  }
  0x7e   :  { %76 = vst.msk [vmem:[%s185_s1 + $0x1] ss:$8 sm:$0xf] %vm11_vm0, %v20_v7  }
  0x7f   :  { %77 = vst.msk [vmem:[%s185_s1 + $0x1] ss:$8 sm:$0x30] %vm11_vm0, %v20_v7  }
  0x80   :  { %80 = vst.msk [vmem:[%s185_s1 + $0x3] ss:$8 sm:$0xf] %vm11_vm0, %v36_v8  }
  0x81   :  { %81 = vst.msk [vmem:[%s185_s1 + $0x3] ss:$8 sm:$0x30] %vm11_vm0, %v36_v8  }
  0x85   :  { %v28_v9 = vpop.permute.xlu0 %27   ;;  %v44_v10 = vpop.permute.xlu1 %43  }
  0x86   :  { %78 = vst.msk [vmem:[%s185_s1 + $0x2] ss:$8 sm:$0xf] %vm11_vm0, %v28_v9  }
  0x87   :  { %79 = vst.msk [vmem:[%s185_s1 + $0x2] ss:$8 sm:$0x30] %vm11_vm0, %v28_v9  }
  0x88   :  { %82 = vst.msk [vmem:[%s185_s1 + $0x4] ss:$8 sm:$0xf] %vm11_vm0, %v44_v10  }
  0x89   :  { %83 = vst.msk [vmem:[%s185_s1 + $0x4] ss:$8 sm:$0x30] %vm11_vm0, %v44_v10  }
  0x8d   :  { %v68_v11 = vpop.permute.xlu0 %67  }
  0x8e   :  { %88 = vst.msk [vmem:[%s185_s1 + $0x7] ss:$8 sm:$0xf] %vm11_vm0, %v68_v11  }
  0x8f   :  { %89 = vst.msk [vmem:[%s185_s1 + $0x7] ss:$8 sm:$0x30] %vm11_vm0, %v68_v11  }

// kernel: cell_attn_forward.1
= control target key start
LH: loop header
LB: loop body
LE: loop exit
PB: predicated region body
PF: predicated region fallthrough
CT: control target
= control target key end

     0   :  { %v2178_v0 = vmov 0   ;;  %vm57_vm0 = vcmask 64512   ;;  %vm423_vm1 = vcmask 195584   ;;  %s3258_s3 = inlined_call_operand.vmem [shape: f32[8,24,1], index: 3, kind: input, shape index: {}]   ;;  %s3259_s2 = inlined_call_operand.vmem [shape: f32[2,24,1], index: 2, kind: input, shape index: {}]   ;;  %s3260_s0 = inlined_call_operand.vmem [shape: f32[8,512], index: 0, kind: input, shape index: {}]   ;;  %s3261_s1 = inlined_call_operand.vmem [shape: f32[2,24,8], index: 1, kind: input, shape index: {}]   ;;  %s3262_s5 = inlined_call_operand.vmem [shape: f32[2,24,1], index: 5, kind: input, shape index: {}]   ;;  %s3263_s6 = inlined_call_operand.vmem [shape: f32[8,24,1], index: 6, kind: input, shape index: {}]   ;;  %s3264_s4 = inlined_call_operand.vmem [shape: f32[2,24,24], index: 4, kind: input, shape index: {}]   ;;  %s3265_s8 = inlined_call_operand.vmem [shape: f32[2,8,24], index: 8, kind: input, shape index: {}]   ;;  %s3266_s7 = inlined_call_operand.vmem [shape: f32[2,8,24], index: 7, kind: input, shape index: {}]   ;;  %s3267_s9 = inlined_call_operand.vmem [shape: f32[8,512], index: 9, kind: output, shape index: {}]  }
   0x1   :  { %1981 = vset.pattern.permute.xlu2 %v2178_v0  ;;  %1980 = vset.pattern.permute.xlu1 %v2178_v0  ;;  %v1872_v1 = vld [vmem:[%s3258_s3 + $0x28] sm:$0xff]  ;;  %v41_v2 = vld [vmem:[%s3259_s2 + $0x10] sm:$0xff]  ;;  %v39_v3 = vld [vmem:[%s3259_s2] sm:$0xff] }
   0x2   :  { %1979 = vset.pattern.permute.xlu0 %v2178_v0  ;;  %297 = vperm.xlu2 %1981, %v1872_v1   ;;  %v32_v4 = vld [vmem:[%s3260_s0] sm:$0xff]  ;;  %v33_v5 = vld [vmem:[%s3260_s0 + $0x8] sm:$0xff]  ;;  %v34_v6 = vld [vmem:[%s3260_s0 + $0x10] sm:$0xff] }
   0x3   :  { %54 = vperm.xlu0 %1979, %v41_v2   ;;  %44 = vperm.xlu1 %1980, %v39_v3   ;;  %v35_v7 = vld [vmem:[%s3260_s0 + $0x18] sm:$0xff]  ;;  %v36_v8 = vld [vmem:[%s3261_s1] sm:$0xff]  ;;  %v172_v9 = vld [vmem:[%s3258_s3 + $0x8] sm:$0xff] }
   0x4   :  { %82 = vmatpush.msra.mxu0 %v32_v4  ;;  %108 = vmatpush.msra.mxu1 %v33_v5  ;;  %v40_v10 = vld [vmem:[%s3259_s2 + $0x8] sm:$0xff]  ;;  %v173_v11 = vld [vmem:[%s3258_s3 + $0x10] sm:$0xff]  ;;  %v171_v13 = vld [vmem:[%s3258_s3] sm:$0xff] }
   0x5   :  { %134 = vmatpush.msra.mxu2 %v34_v6  ;;  %160 = vmatpush.msra.mxu3 %v35_v7  ;;  %v37_v12 = vld [vmem:[%s3261_s1 + $0x8] sm:$0xff]  ;;  %v1871_v14 = vld [vmem:[%s3258_s3 + $0x20] sm:$0xff]  ;;  %v38_v16 = vld [vmem:[%s3261_s1 + $0x10] sm:$0xff] }
   0x6   :  { %1858 = vmatmul.msk.f32.vlgmr.msra.gmra.mxu0 %vm57_vm0, %v36_v8  ;;  %1861 = vmatmul.msk.f32.vlgmr.msra.gmra.mxu1 %vm57_vm0, %v36_v8  ;;  %v1875_v15 = vld [vmem:[%s3258_s3 + $0x40] sm:$0xff]  ;;  %v1878_v17 = vld [vmem:[%s3258_s3 + $0x58] sm:$0xff]  ;;  %v1876_v20 = vld [vmem:[%s3258_s3 + $0x48] sm:$0xff] }
   0x7   :  { %1864 = vmatmul.msk.f32.vlgmr.msra.gmra.mxu2 %vm57_vm0, %v36_v8  ;;  %1867 = vmatmul.msk.f32.vlgmr.msra.gmra.mxu3 %vm57_vm0, %v36_v8  ;;  %v1870_v18 = vld [vmem:[%s3258_s3 + $0x18] sm:$0xff]  ;;  %v1873_v21 = vld [vmem:[%s3258_s3 + $0x30] sm:$0xff]  ;;  %v405_v23 = vld [vmem:[%s3262_s5] sm:$0xff] }
   0x8   :  { %v1874_v19 = vld [vmem:[%s3258_s3 + $0x38] sm:$0xff]  ;;  %v1877_v22 = vld [vmem:[%s3258_s3 + $0x50] sm:$0xff]  ;;  %v406_v25 = vld [vmem:[%s3262_s5 + $0x8] sm:$0xff] }
   0x9   :  { %v407_v24 = vld [vmem:[%s3262_s5 + $0x10] sm:$0xff]  ;;  %v538_v26 = vld [vmem:[%s3263_s6 + $0x8] sm:$0xff]  ;;  %v537_v29 = vld [vmem:[%s3263_s6] sm:$0xff] }
   0xa   :  { %253 = vperm.xlu2 %1981, %v172_v9   ;;  %v539_v27 = vld [vmem:[%s3263_s6 + $0x10] sm:$0xff]  ;;  %v1893_v28 = vld [vmem:[%s3263_s6 + $0x28] sm:$0xff]  ;;  %v1892_v30 = vld [vmem:[%s3263_s6 + $0x20] sm:$0xff] }
   0xb   :  { %49 = vperm.xlu0 %1979, %v40_v10   ;;  %258 = vperm.xlu1 %1980, %v173_v11   ;;  %v1896_v31 = vld [vmem:[%s3263_s6 + $0x40] sm:$0xff]  ;;  %v1899_v32 = vld [vmem:[%s3263_s6 + $0x58] sm:$0xff]  ;;  %v1897_v35 = vld [vmem:[%s3263_s6 + $0x48] sm:$0xff] }
   0xc   :  { %v1891_v33 = vld [vmem:[%s3263_s6 + $0x18] sm:$0xff]  ;;  %v1894_v36 = vld [vmem:[%s3263_s6 + $0x30] sm:$0xff]  ;;  %v1913_v39 = vld [vmem:[%s3259_s2 + $0x28] sm:$0xff] }
   0xd   :  { %v1895_v34 = vld [vmem:[%s3263_s6 + $0x38] sm:$0xff]  ;;  %v1898_v37 = vld [vmem:[%s3263_s6 + $0x50] sm:$0xff]  ;;  %v1912_v40 = vld [vmem:[%s3259_s2 + $0x20] sm:$0xff] }
   0xe   :  { %1859 = vmatmul.msk.f32.gmra.mxu0 %vm57_vm0, %v37_v12  ;;  %1862 = vmatmul.msk.f32.gmra.mxu1 %vm57_vm0, %v37_v12  ;;  %v1911_v38 = vld [vmem:[%s3259_s2 + $0x18] sm:$0xff]  ;;  %v1927_v41 = vld [vmem:[%s3258_s3 + $0x68] sm:$0xff]  ;;  %v1928_v42 = vld [vmem:[%s3258_s3 + $0x70] sm:$0xff] }
   0xf   :  { %1865 = vmatmul.msk.f32.gmra.mxu2 %vm57_vm0, %v37_v12  ;;  %1868 = vmatmul.msk.f32.gmra.mxu3 %vm57_vm0, %v37_v12  ;;  %v1931_v43 = vld [vmem:[%s3258_s3 + $0x88] sm:$0xff]  ;;  %v1926_v44 = vld [vmem:[%s3258_s3 + $0x60] sm:$0xff]  ;;  %v1937_v47 = vld [vmem:[%s3258_s3 + $0xb8] sm:$0xff] }
  0x10   :  { %v1930_v45 = vld [vmem:[%s3258_s3 + $0x80] sm:$0xff]  ;;  %v1929_v48 = vld [vmem:[%s3258_s3 + $0x78] sm:$0xff]  ;;  %v1935_v50 = vld [vmem:[%s3258_s3 + $0xa8] sm:$0xff] }
  0x11   :  { %v1934_v46 = vld [vmem:[%s3258_s3 + $0xa0] sm:$0xff]  ;;  %v1933_v49 = vld [vmem:[%s3258_s3 + $0x98] sm:$0xff]  ;;  %v1932_v51 = vld [vmem:[%s3258_s3 + $0x90] sm:$0xff] }
  0x12   :  { %248 = vperm.xlu2 %1981, %v171_v13   ;;  %v1936_v52 = vld [vmem:[%s3258_s3 + $0xb0] sm:$0xff]  ;;  %v1941_v56 = vld [vmem:[%s3262_s5 + $0x18] sm:$0xff]  ;;  %v1943_v57 = vld [vmem:[%s3262_s5 + $0x28] sm:$0xff] }
  0x13   :  { %292 = vperm.xlu0 %1979, %v1871_v14   ;;  %336 = vperm.xlu1 %1980, %v1875_v15   ;;  %v1942_v58 = vld [vmem:[%s3262_s5 + $0x20] sm:$0xff]  ;;  %v1957_v62 = vld [vmem:[%s3263_s6 + $0x68] sm:$0xff]  ;;  %v1958_v63 = vld [vmem:[%s3263_s6 + $0x70] sm:$0xff] }
  0x14   :  { %v1961_v0 = vld [vmem:[%s3263_s6 + $0x88] sm:$0xff]  ;;  %v1956_v8 = vld [vmem:[%s3263_s6 + $0x60] sm:$0xff] }
  0x15   :  { %v1960_v10 = vld [vmem:[%s3263_s6 + $0x80] sm:$0xff] }
  0x16   :  { %1860 = vmatmul.msk.f32.gmra.mxu0 %vm57_vm0, %v38_v16  ;;  %1863 = vmatmul.msk.f32.gmra.mxu1 %vm57_vm0, %v38_v16  ;;  %v1964_v11 = vld [vmem:[%s3263_s6 + $0xa0] sm:$0xff] }
  0x17   :  { %1866 = vmatmul.msk.f32.gmra.mxu2 %vm57_vm0, %v38_v16  ;;  %1869 = vmatmul.msk.f32.gmra.mxu3 %vm57_vm0, %v38_v16 }
  0x1a   :  { %375 = vperm.xlu2 %1981, %v1878_v17  }
  0x1b   :  { %287 = vperm.xlu0 %1979, %v1870_v18   ;;  %331 = vperm.xlu1 %1980, %v1874_v19  }
  0x22   :  { %365 = vperm.xlu2 %1981, %v1876_v20  }
  0x23   :  { %326 = vperm.xlu0 %1979, %v1873_v21   ;;  %370 = vperm.xlu1 %1980, %v1877_v22  }
  0x2a   :  { %410 = vperm.xlu2 %1981, %v405_v23  }
  0x2b   :  { %420 = vperm.xlu0 %1979, %v407_v24   ;;  %415 = vperm.xlu1 %1980, %v406_v25  }
  0x32   :  { %619 = vperm.xlu2 %1981, %v538_v26  }
  0x33   :  { %624 = vperm.xlu0 %1979, %v539_v27   ;;  %663 = vperm.xlu1 %1980, %v1893_v28  }
  0x3a   :  { %614 = vperm.xlu2 %1981, %v537_v29  }
  0x3b   :  { %658 = vperm.xlu0 %1979, %v1892_v30   ;;  %702 = vperm.xlu1 %1980, %v1896_v31   ;;  %v1967_v30 = vld [vmem:[%s3263_s6 + $0xb8] sm:$0xff] }
  0x42   :  { %741 = vperm.xlu2 %1981, %v1899_v32  }
  0x43   :  { %653 = vperm.xlu0 %1979, %v1891_v33   ;;  %697 = vperm.xlu1 %1980, %v1895_v34  }
  0x4a   :  { %731 = vperm.xlu2 %1981, %v1897_v35  }
  0x4b   :  { %692 = vperm.xlu0 %1979, %v1894_v36   ;;  %736 = vperm.xlu1 %1980, %v1898_v37   ;;  %v1959_v37 = vld [vmem:[%s3263_s6 + $0x78] sm:$0xff] }
  0x52   :  { %946 = vperm.xlu2 %1981, %v1911_v38   ;;  %v1963_v38 = vld [vmem:[%s3263_s6 + $0x98] sm:$0xff] }
  0x53   :  { %956 = vperm.xlu0 %1979, %v1913_v39   ;;  %951 = vperm.xlu1 %1980, %v1912_v40  }
  0x5a   :  { %1155 = vperm.xlu2 %1981, %v1927_v41  }
  0x5b   :  { %1160 = vperm.xlu0 %1979, %v1928_v42   ;;  %1199 = vperm.xlu1 %1980, %v1931_v43  }
  0x5c   :  { %v2397_v53 = vpop.permute.xlu2 %297 }
  0x62   :  { %1150 = vperm.xlu2 %1981, %v1926_v44  }
  0x63   :  { %1194 = vperm.xlu0 %1979, %v1930_v45   ;;  %1238 = vperm.xlu1 %1980, %v1934_v46  }
  0x64   :  { %v2414_v61 = vpop.permute.xlu2 %253 }
  0x6a   :  { %1277 = vperm.xlu2 %1981, %v1937_v47  }
  0x6b   :  { %1189 = vperm.xlu0 %1979, %v1929_v48   ;;  %1233 = vperm.xlu1 %1980, %v1933_v49  }
  0x6c   :  { %v2438_v12 = vpop.permute.xlu2 %248 }
  0x72   :  { %1267 = vperm.xlu2 %1981, %v1935_v50  }
  0x73   :  { %1228 = vperm.xlu0 %1979, %v1932_v51   ;;  %1272 = vperm.xlu1 %1980, %v1936_v52  }
  0x75   :  { %v2399_v54 = vpop.permute.xlu0 %54  ;;  %v45_v55 = vpop.permute.xlu1 %44 }
  0x7a   :  { %1314 = vperm.xlu2 %1981, %v1941_v56  }
  0x7b   :  { %1324 = vperm.xlu0 %1979, %v1943_v57   ;;  %1319 = vperm.xlu1 %1980, %v1942_v58   ;;  %v2490_v58 = vpop.permute.xlu2 %375 }
  0x7d   :  { %v2410_v59 = vpop.permute.xlu0 %49  ;;  %v2412_v60 = vpop.permute.xlu1 %258 }
  0x82   :  { %1523 = vperm.xlu2 %1981, %v1957_v62  }
  0x83   :  { %v84_v1 = vpop.f32.mrf.mxu0  ;;  %v110_v2 = vpop.f32.mrf.mxu1  ;;  %1528 = vperm.xlu0 %1979, %v1958_v63   ;;  %1567 = vperm.xlu1 %1980, %v1961_v0  }
  0x84   :  { %v85_v3 = vadd.f32 %v84_v1, %v45_v55  ;;  %v111_v6 = vadd.f32 %v110_v2, %v45_v55 }
  0x85   :  { %v2425_v4 = vpop.permute.xlu0 %292  ;;  %v2427_v5 = vpop.permute.xlu1 %336 }
  0x86   :  { %v198_v7 = vmul.f32 0.5, %v85_v3  ;;  %v199_v9 = vmul.f32 0.5, %v111_v6  ;;  %1982 = vtanh.f32 %v85_v3  ;;  %v273_v21 = vmax.f32 %v85_v3, 0.0 }
  0x87   :  { %1984 = vtanh.f32 %v111_v6  ;;  %v274_v24 = vmax.f32 %v111_v6, 0.0  ;;  %v261_v31 = vmul.f32 %v2438_v12, %v85_v3  ;;  %v2459_v32 = vmul.f32 %v2438_v12, %v111_v6 }
  0x88   :  { %1986 = vtanh.f32 %v198_v7 }
  0x89   :  { %1988 = vtanh.f32 %v199_v9 }
  0x8a   :  { %v136_v13 = vpop.f32.mrf.mxu2  ;;  %v162_v14 = vpop.f32.mrf.mxu3  ;;  %1518 = vperm.xlu2 %1981, %v1956_v8  }
  0x8b   :  { %v2440_v15 = vadd.f32 %v136_v13, %v45_v55  ;;  %v2442_v16 = vadd.f32 %v162_v14, %v45_v55  ;;  %v87_v17 = vpop.f32.mrf.mxu0  ;;  %v113_v18 = vpop.f32.mrf.mxu1  ;;  %1562 = vperm.xlu0 %1979, %v1960_v10   ;;  %1606 = vperm.xlu1 %1980, %v1964_v11   ;;  %v1965_v13 = vld [vmem:[%s3263_s6 + $0xa8] sm:$0xff] }
  0x8c   :  { %v88_v19 = vadd.f32 %v87_v17, %v2410_v59  ;;  %v114_v20 = vadd.f32 %v113_v18, %v2410_v59  ;;  %v2450_v28 = vpop.eup %1982 }
  0x8d   :  { %1990 = vtanh.f32 %v2440_v15  ;;  %v200_v22 = vmul.f32 0.5, %v2440_v15  ;;  %v201_v23 = vmul.f32 0.5, %v2442_v16  ;;  %v288_v27 = vpop.permute.xlu0 %287  ;;  %v2452_v29 = vpop.permute.xlu1 %331  ;;  %v275_v36 = vmax.f32 %v2440_v15, 0.0 }
  0x8e   :  { %1992 = vtanh.f32 %v2442_v16  ;;  %v202_v25 = vmul.f32 0.5, %v88_v19  ;;  %v277_v26 = vmax.f32 %v88_v19, 0.0  ;;  %v2461_v33 = vpop.eup %1984  ;;  %v203_v34 = vmul.f32 0.5, %v114_v20 }
  0x8f   :  { %1994 = vtanh.f32 %v200_v22  ;;  %v278_v35 = vmax.f32 %v114_v20, 0.0  ;;  %v1987_v39 = vpop.eup %1986  ;;  %v276_v40 = vmax.f32 %v2442_v16, 0.0  ;;  %v300_v41 = vmul.f32 %v288_v27, %v273_v21  ;;  %v1962_v21 = vld [vmem:[%s3263_s6 + $0x90] sm:$0xff] }
  0x90   :  { %1996 = vtanh.f32 %v201_v23  ;;  %v2471_v42 = vmul.f32 %v288_v27, %v274_v24  ;;  %v2473_v43 = vpop.eup %1988  ;;  %v2475_v44 = vmul.f32 %v288_v27, %v275_v36  ;;  %v265_v47 = vmul.f32 %v2414_v61, %v88_v19  ;;  %v1966_v22 = vld [vmem:[%s3263_s6 + $0xb0] sm:$0xff] }
  0x91   :  { %1998 = vtanh.f32 %v88_v19  ;;  %v304_v48 = vmul.f32 %v2425_v4, %v277_v26  ;;  %v266_v56 = vmul.f32 %v2414_v61, %v114_v20  ;;  %v305_v0 = vmul.f32 %v2425_v4, %v278_v35 }
  0x92   :  { %2000 = vtanh.f32 %v202_v25  ;;  %v139_v45 = vpop.f32.mrf.mxu2  ;;  %v165_v46 = vpop.f32.mrf.mxu3  ;;  %1645 = vperm.xlu2 %1981, %v1967_v30   ;;  %v222_v3 = vadd.f32 1.0, %v1987_v39  ;;  %v2502_v7 = vmul.f32 %v288_v27, %v276_v40  ;;  %v312_v17 = vadd.f32 %v300_v41, %v261_v31 }
  0x93   :  { %v2479_v49 = vpop.eup %1990  ;;  %2002 = vtanh.f32 %v114_v20  ;;  %v2482_v50 = vadd.f32 %v139_v45, %v2410_v59  ;;  %v2485_v51 = vadd.f32 %v165_v46, %v2410_v59  ;;  %v90_v52 = vpop.f32.mrf.mxu0  ;;  %1557 = vperm.xlu0 %1979, %v1959_v37   ;;  %1601 = vperm.xlu1 %1980, %v1963_v38   ;;  %v316_v14 = vadd.f32 %v304_v48, %v265_v47 }
  0x94   :  { %v116_v55 = vpop.f32.mrf.mxu1  ;;  %v2488_v57 = vpop.eup %1992  ;;  %2004 = vtanh.f32 %v203_v34  ;;  %v91_v62 = vadd.f32 %v90_v52, %v2399_v54  ;;  %v317_v23 = vadd.f32 %v305_v0, %v266_v56  ;;  %v234_v31 = vmul.f32 0.5, %v222_v3 }
  0x95   :  { %v117_v63 = vadd.f32 %v116_v55, %v2399_v54  ;;  %v2495_v1 = vpop.eup %1994  ;;  %2006 = vtanh.f32 %v2482_v50  ;;  %v204_v59 = vmul.f32 0.5, %v2482_v50  ;;  %v205_v2 = vmul.f32 0.5, %v2485_v51  ;;  %v2516_v26 = vpop.permute.xlu0 %326 }
  0x96   :  { %v2500_v6 = vpop.eup %1996  ;;  %2008 = vtanh.f32 %v2485_v51  ;;  %v206_v8 = vmul.f32 0.5, %v91_v62  ;;  %v281_v9 = vmax.f32 %v91_v62, 0.0  ;;  %v279_v19 = vmax.f32 %v2482_v50, 0.0  ;;  %v2518_v27 = vpop.permute.xlu1 %370 }
  0x97   :  { %v1999_v10 = vpop.eup %1998  ;;  %2010 = vtanh.f32 %v204_v59  ;;  %v282_v11 = vmax.f32 %v117_v63, 0.0  ;;  %v207_v20 = vmul.f32 0.5, %v117_v63  ;;  %v280_v25 = vmax.f32 %v2485_v51, 0.0  ;;  %v2537_v59 = vpop.permute.xlu2 %365 }
  0x98   :  { %v2001_v18 = vpop.eup %2000  ;;  %2012 = vtanh.f32 %v205_v2  ;;  %v269_v37 = vmul.f32 %v2412_v60, %v91_v62  ;;  %v308_v38 = vmul.f32 %v2397_v53, %v281_v9  ;;  %v270_v39 = vmul.f32 %v2412_v60, %v117_v63 }
  0x99   :  { %v2003_v24 = vpop.eup %2002  ;;  %2014 = vtanh.f32 %v91_v62  ;;  %v226_v30 = vadd.f32 1.0, %v2001_v18  ;;  %v309_v46 = vmul.f32 %v2397_v53, %v282_v11  ;;  %v339_v55 = vmul.f32 %v2516_v26, %v234_v31 }
  0x9a   :  { %v2005_v34 = vpop.eup %2004  ;;  %2016 = vtanh.f32 %v206_v8  ;;  %v142_v35 = vpop.f32.mrf.mxu2  ;;  %1635 = vperm.xlu2 %1981, %v1965_v13   ;;  %v382_v0 = vmul.f32 %v1999_v10, %v2518_v27  ;;  %v320_v2 = vadd.f32 %v308_v38, %v269_v37  ;;  %v383_v9 = vmul.f32 %v2003_v24, %v2518_v27 }
  0x9b   :  { %v168_v36 = vpop.f32.mrf.mxu3  ;;  %v2523_v40 = vpop.eup %2006  ;;  %2018 = vtanh.f32 %v117_v63  ;;  %v143_v41 = vadd.f32 %v142_v35, %v2399_v54  ;;  %1596 = vperm.xlu0 %1979, %v1962_v21   ;;  %1640 = vperm.xlu1 %1980, %v1966_v22   ;;  %v238_v48 = vmul.f32 0.5, %v226_v30  ;;  %v227_v52 = vadd.f32 1.0, %v2005_v34 }
  0x9c   :  { %v2527_v45 = vadd.f32 %v168_v36, %v2399_v54  ;;  %v2530_v47 = vpop.eup %2008  ;;  %2020 = vtanh.f32 %v207_v20  ;;  %v351_v13 = vadd.f32 %v339_v55, %v312_v17  ;;  %v378_v18 = vmul.f32 %v2450_v28, %v2537_v59 }
  0x9d   :  { %v2011_v56 = vpop.eup %2010  ;;  %2022 = vtanh.f32 %v143_v41  ;;  %v208_v62 = vmul.f32 0.5, %v143_v41  ;;  %v343_v3 = vmul.f32 %v2452_v29, %v238_v48  ;;  %v239_v8 = vmul.f32 0.5, %v227_v52 }
  0x9e   :  { %v209_v63 = vmul.f32 0.5, %v2527_v45  ;;  %v2535_v54 = vpop.eup %2012  ;;  %v223_v20 = vadd.f32 1.0, %v2473_v43  ;;  %v321_v10 = vadd.f32 %v309_v46, %v270_v39  ;;  %v283_v34 = vmax.f32 %v143_v41, 0.0 }
  0x9f   :  { %v2015_v11 = vpop.eup %2014  ;;  %2024 = vtanh.f32 %v208_v62  ;;  %v355_v22 = vadd.f32 %v343_v3, %v316_v14  ;;  %v344_v30 = vmul.f32 %v2452_v29, %v239_v8  ;;  %v284_v17 = vmax.f32 %v2527_v45, 0.0 }
  0xa0   :  { %v2017_v21 = vpop.eup %2016  ;;  %2026 = vtanh.f32 %v209_v63  ;;  %v235_v24 = vmul.f32 0.5, %v223_v20  ;;  %v386_v37 = vmul.f32 %v2015_v11, %v2490_v58  ;;  %v313_v43 = vadd.f32 %v2471_v42, %v2459_v32 }
  0xa1   :  { %v2019_v31 = vpop.eup %2018  ;;  %2028 = vtanh.f32 %v2527_v45  ;;  %v230_v35 = vadd.f32 1.0, %v2017_v21  ;;  %v356_v28 = vadd.f32 %v344_v30, %v317_v23  ;;  %v2550_v46 = vadd.f32 %v378_v18, %v351_v13 }
  0xa2   :  { %v2021_v36 = vpop.eup %2020  ;;  %v379_v48 = vmul.f32 %v2461_v33, %v2537_v59  ;;  %v387_v52 = vmul.f32 %v2019_v31, %v2490_v58  ;;  %v2555_v55 = vadd.f32 %v382_v0, %v355_v22  ;;  %v340_v62 = vmul.f32 %v2516_v26, %v235_v24 }
  0xa3   :  { %v2023_v38 = vpop.eup %2022  ;;  %v242_v39 = vmul.f32 0.5, %v230_v35  ;;  %v231_v14 = vadd.f32 1.0, %v2021_v36  ;;  %v271_v63 = vmul.f32 %v2412_v60, %v143_v41  ;;  %v2560_v42 = vadd.f32 %v383_v9, %v356_v28 }
  0xa4   :  { %v310_v8 = vmul.f32 %v2397_v53, %v283_v34  ;;  %v388_v33 = vmul.f32 %v2023_v38, %v2490_v58  ;;  %v272_v0 = vmul.f32 %v2412_v60, %v2527_v45  ;;  %v228_v18 = vadd.f32 1.0, %v2011_v56 }
  0xa5   :  { %v2025_v23 = vpop.eup %2024  ;;  %v347_v3 = vmul.f32 %v2427_v5, %v242_v39  ;;  %v243_v32 = vmul.f32 0.5, %v231_v14  ;;  %v311_v30 = vmul.f32 %v2397_v53, %v284_v17  ;;  %v352_v9 = vadd.f32 %v340_v62, %v313_v43 }
  0xa6   :  { %v2027_v11 = vpop.eup %2026  ;;  %v232_v13 = vadd.f32 1.0, %v2025_v23  ;;  %v240_v35 = vmul.f32 0.5, %v228_v18  ;;  %v267_v34 = vmul.f32 %v2414_v61, %v2482_v50  ;;  %v306_v60 = vmul.f32 %v2425_v4, %v279_v19 }
  0xa7   :  { %v2029_v20 = vpop.eup %2028  ;;  %v359_v21 = vadd.f32 %v347_v3, %v320_v2  ;;  %v348_v41 = vmul.f32 %v2427_v5, %v243_v32  ;;  %v233_v22 = vadd.f32 1.0, %v2027_v11  ;;  %v322_v45 = vadd.f32 %v310_v8, %v271_v63 }
  0xa8   :  { %v244_v31 = vmul.f32 0.5, %v232_v13  ;;  %v345_v2 = vmul.f32 %v2452_v29, %v240_v35  ;;  %v229_v53 = vadd.f32 1.0, %v2535_v54  ;;  %v323_v43 = vadd.f32 %v311_v30, %v272_v0  ;;  %v402_v54 = vld [vmem:[%s3264_s4] sm:$0xff]  ;;  %v403_v0 = vld [vmem:[%s3264_s4 + $0x8] sm:$0xff] }
  0xa9   :  { %v2570_v24 = vadd.f32 %v386_v37, %v359_v21  ;;  %v360_v36 = vadd.f32 %v348_v41, %v321_v10  ;;  %v245_v28 = vmul.f32 0.5, %v233_v22  ;;  %v318_v10 = vadd.f32 %v306_v60, %v267_v34 }
  0xaa   :  { %v349_v56 = vmul.f32 %v2427_v5, %v244_v31  ;;  %v241_v39 = vmul.f32 0.5, %v229_v53  ;;  %v268_v50 = vmul.f32 %v2414_v61, %v2485_v51  ;;  %v307_v19 = vmul.f32 %v2425_v4, %v280_v25 }
  0xab   :  { %446 = vmatpush.msrb.mxu0 %v2570_v24  ;;  %v2579_v17 = vadd.f32 %v387_v52, %v360_v36  ;;  %v350_v37 = vmul.f32 %v2427_v5, %v245_v28  ;;  %v389_v5 = vmul.f32 %v2029_v20, %v2490_v58  ;;  %v357_v52 = vadd.f32 %v345_v2, %v318_v10 }
  0xac   :  { %v361_v38 = vadd.f32 %v349_v56, %v322_v45  ;;  %v224_v62 = vadd.f32 1.0, %v2495_v1  ;;  %v384_v61 = vmul.f32 %v2523_v40, %v2518_v27  ;;  %v319_v4 = vadd.f32 %v307_v19, %v268_v50 }
  0xad   :  { %472 = vmatpush.msrb.mxu1 %v2579_v17  ;;  %447 = vmatpush.msrb.mxu0 %v2555_v55  ;;  %v362_v14 = vadd.f32 %v350_v37, %v323_v43  ;;  %v346_v51 = vmul.f32 %v2452_v29, %v241_v39  ;;  %v2601_v25 = vadd.f32 %v379_v48, %v352_v9  ;;  %v225_v32 = vadd.f32 1.0, %v2500_v6 }
  0xae   :  { %v2594_v63 = vadd.f32 %v388_v33, %v361_v38  ;;  %v236_v58 = vmul.f32 0.5, %v224_v62  ;;  %v263_v1 = vmul.f32 %v2438_v12, %v2440_v15  ;;  %v2609_v40 = vadd.f32 %v384_v61, %v357_v52 }
  0xaf   :  { %473 = vmatpush.msrb.mxu1 %v2560_v42  ;;  %448 = vmatpush.msrb.mxu0 %v2550_v46  ;;  %v2603_v23 = vadd.f32 %v389_v5, %v362_v14  ;;  %v358_v3 = vadd.f32 %v346_v51, %v319_v4  ;;  %v385_v29 = vmul.f32 %v2530_v47, %v2518_v27  ;;  %v237_v11 = vmul.f32 0.5, %v225_v32 }
  0xb0   :  { %1879 = vmatmul.msk.f32.vlgmr.msrb.gmra.mxu0 %vm423_vm1, %v402_v54  ;;  %498 = vmatpush.msrb.mxu2 %v2594_v63  ;;  %3274 = vst [vmem:[#allocation3_spill] sm:$0xff] %v2609_v40  ;;  %v314_v48 = vadd.f32 %v2475_v44, %v263_v1  ;;  %v341_v15 = vmul.f32 %v2516_v26, %v236_v58 }
  0xb1   :  { %3273 = vst [vmem:[#allocation2_spill] sm:$0xff] %v2603_v23  ;;  %474 = vmatpush.msrb.mxu1 %v2601_v25  ;;  %524 = vmatpush.msrb.mxu3 %v2603_v23  ;;  %v2620_v8 = vadd.f32 %v385_v29, %v358_v3  ;;  %v264_v27 = vmul.f32 %v2438_v12, %v2442_v16 }
  0xb2   :  { %1882 = vmatmul.msk.f32.vlgmr.msrb.gmra.mxu1 %vm423_vm1, %v402_v54  ;;  %499 = vmatpush.msrb.mxu2 %v2609_v40  ;;  %v353_v47 = vadd.f32 %v341_v15, %v314_v48  ;;  %v380_v6 = vmul.f32 %v2479_v49, %v2537_v59  ;;  %v342_v13 = vmul.f32 %v2516_v26, %v237_v11  ;;  %v404_v49 = vld [vmem:[%s3264_s4 + $0x10] sm:$0xff]  ;;  %v2655_v26 = vpop.permute.xlu1 %415 }
  0xb3   :  { %3275 = vst [vmem:[#allocation4_spill] sm:$0xff] %v2620_v8  ;;  %525 = vmatpush.msrb.mxu3 %v2620_v8  ;;  %v315_v44 = vadd.f32 %v2502_v7, %v264_v27  ;;  %v381_v12 = vmul.f32 %v2488_v57, %v2537_v59  ;;  %v411_v57 = vpop.permute.xlu2 %410  ;;  %v2653_v7 = vpop.permute.xlu0 %420 }
  0xb4   :  { %v2629_v33 = vadd.f32 %v380_v6, %v353_v47 }
  0xb5   :  { %v354_v18 = vadd.f32 %v342_v13, %v315_v44 }
  0xb6   :  { %3276 = vst [vmem:[#allocation5_spill] sm:$0xff] %v2629_v33  ;;  %500 = vmatpush.msrb.mxu2 %v2629_v33 }
  0xb7   :  { %v2637_v16 = vadd.f32 %v381_v12, %v354_v18  ;;  %1885 = vmatmul.msk.f32.vlgmr.msrb.gmra.mxu2 %vm423_vm1, %v402_v54 }
  0xb8   :  { %1880 = vmatmul.msk.f32.gmra.mxu0 %vm423_vm1, %v403_v0 }
  0xb9   :  { %3277 = vst [vmem:[#allocation6_spill] sm:$0xff] %v2637_v16  ;;  %526 = vmatpush.msrb.mxu3 %v2637_v16 }
  0xba   :  { %1883 = vmatmul.msk.f32.gmra.mxu1 %vm423_vm1, %v403_v0  ;;  %1888 = vmatmul.msk.f32.vlgmr.msrb.gmra.mxu3 %vm423_vm1, %v402_v54  ;;  %v2661_v21 = vpop.permute.xlu1 %663 }
  0xbb   :  { %v2657_v59 = vpop.permute.xlu2 %619  ;;  %v2659_v20 = vpop.permute.xlu0 %624 }
  0xbf   :  { %1886 = vmatmul.msk.f32.gmra.mxu2 %vm423_vm1, %v403_v0 }
  0xc0   :  { %1881 = vmatmul.msk.f32.gmra.mxu0 %vm423_vm1, %v404_v49 }
  0xc2   :  { %1884 = vmatmul.msk.f32.gmra.mxu1 %vm423_vm1, %v404_v49  ;;  %1889 = vmatmul.msk.f32.gmra.mxu3 %vm423_vm1, %v403_v0  ;;  %v2667_v35 = vpop.permute.xlu1 %702 }
  0xc3   :  { %v2663_v41 = vpop.permute.xlu2 %614  ;;  %v2665_v30 = vpop.permute.xlu0 %658 }
  0xc7   :  { %1887 = vmatmul.msk.f32.gmra.mxu2 %vm423_vm1, %v404_v49 }
  0xca   :  { %1890 = vmatmul.msk.f32.gmra.mxu3 %vm423_vm1, %v404_v49  ;;  %v2676_v50 = vpop.permute.xlu1 %697 }
  0xcb   :  { %v2669_v28 = vpop.permute.xlu2 %741  ;;  %v2672_v10 = vpop.permute.xlu0 %653 }
  0xd3   :  { %v2685_v15 = vpop.permute.xlu2 %731 }
 0x12d   :  { %v450_v22 = vpop.f32.mrf.mxu0 }
 0x12e   :  { %v451_v31 = vadd.f32 %v450_v22, %v411_v57 }
 0x12f   :  { %v476_v9 = vpop.f32.mrf.mxu1 }
 0x130   :  { %v477_v34 = vadd.f32 %v476_v9, %v411_v57  ;;  %v564_v36 = vmul.f32 0.5, %v451_v31  ;;  %2030 = vtanh.f32 %v451_v31  ;;  %v639_v56 = vmax.f32 %v451_v31, 0.0 }
 0x131   :  { %v627_v52 = vmul.f32 %v2663_v41, %v451_v31 }
 0x132   :  { %v565_v60 = vmul.f32 0.5, %v477_v34  ;;  %2032 = vtanh.f32 %v477_v34  ;;  %v640_v53 = vmax.f32 %v477_v34, 0.0  ;;  %v666_v39 = vmul.f32 %v2672_v10, %v639_v56 }
 0x133   :  { %2034 = vtanh.f32 %v564_v36  ;;  %v628_v4 = vmul.f32 %v2663_v41, %v477_v34 }
 0x134   :  { %2036 = vtanh.f32 %v565_v60  ;;  %v667_v14 = vmul.f32 %v2672_v10, %v640_v53  ;;  %v2683_v32 = vadd.f32 %v666_v39, %v627_v52 }
 0x135   :  { %v453_v45 = vpop.f32.mrf.mxu0 }
 0x136   :  { %v454_v2 = vadd.f32 %v453_v45, %v2655_v26  ;;  %v2031_v5 = vpop.eup %2030  ;;  %v2690_v44 = vadd.f32 %v667_v14, %v628_v4 }
 0x137   :  { %v479_v43 = vpop.f32.mrf.mxu1  ;;  %v2696_v18 = vmul.f32 %v2031_v5, %v2685_v15 }
 0x138   :  { %v568_v37 = vmul.f32 0.5, %v454_v2  ;;  %v480_v38 = vadd.f32 %v479_v43, %v2655_v26  ;;  %v2033_v61 = vpop.eup %2032  ;;  %v643_v51 = vmax.f32 %v454_v2, 0.0  ;;  %v631_v11 = vmul.f32 %v2657_v59, %v454_v2 }
 0x139   :  { %v2035_v1 = vpop.eup %2034  ;;  %v2699_v12 = vmul.f32 %v2033_v61, %v2685_v15 }
 0x13a   :  { %v569_v19 = vmul.f32 0.5, %v480_v38  ;;  %v502_v54 = vpop.f32.mrf.mxu2  ;;  %2038 = vtanh.f32 %v568_v37  ;;  %v644_v3 = vmax.f32 %v480_v38, 0.0  ;;  %v2037_v48 = vpop.eup %2036  ;;  %v632_v49 = vmul.f32 %v2657_v59, %v480_v38 }
 0x13b   :  { %v2680_v62 = vadd.f32 %v502_v54, %v411_v57  ;;  %2040 = vtanh.f32 %v454_v2  ;;  %v670_v22 = vmul.f32 %v2665_v30, %v643_v51  ;;  %v588_v9 = vadd.f32 1.0, %v2035_v1 }
 0x13c   :  { %2042 = vtanh.f32 %v569_v19  ;;  %v2705_v36 = vadd.f32 1.0, %v2037_v48  ;;  %v2715_v19 = vpop.permute.xlu1 %736 }
 0x13d   :  { %v456_v58 = vpop.f32.mrf.mxu0  ;;  %v528_v29 = vpop.f32.mrf.mxu3  ;;  %v566_v27 = vmul.f32 0.5, %v2680_v62  ;;  %2044 = vtanh.f32 %v480_v38  ;;  %v2709_v45 = vmul.f32 %v2663_v41, %v2680_v62  ;;  %v682_v5 = vadd.f32 %v670_v22, %v631_v11 }
 0x13e   :  { %v457_v47 = vadd.f32 %v456_v58, %v2653_v7  ;;  %v2692_v13 = vadd.f32 %v528_v29, %v411_v57  ;;  %2046 = vtanh.f32 %v2680_v62  ;;  %v671_v57 = vmul.f32 %v2665_v30, %v644_v3 }
 0x13f   :  { %v482_v6 = vpop.f32.mrf.mxu1  ;;  %2048 = vtanh.f32 %v566_v27 }
 0x140   :  { %v483_v0 = vadd.f32 %v482_v6, %v2653_v7  ;;  %v2039_v31 = vpop.eup %2038  ;;  %v572_v34 = vmul.f32 0.5, %v457_v47  ;;  %v647_v56 = vmax.f32 %v457_v47, 0.0  ;;  %v567_v37 = vmul.f32 0.5, %v2692_v13 }
 0x141   :  { %v2041_v60 = vpop.eup %2040  ;;  %v592_v14 = vadd.f32 1.0, %v2039_v31  ;;  %v2723_v51 = vadd.f32 %v671_v57, %v632_v49  ;;  %v2733_v11 = vmul.f32 %v2663_v41, %v2692_v13  ;;  %v600_v6 = vmul.f32 0.5, %v588_v9 }
 0x142   :  { %v573_v2 = vmul.f32 0.5, %v483_v0  ;;  %v505_v53 = vpop.f32.mrf.mxu2  ;;  %v2043_v43 = vpop.eup %2042  ;;  %2050 = vtanh.f32 %v572_v34  ;;  %v648_v38 = vmax.f32 %v483_v0, 0.0  ;;  %v2721_v4 = vmul.f32 %v2041_v60, %v2715_v19 }
 0x143   :  { %v2713_v39 = vadd.f32 %v505_v53, %v2655_v26  ;;  %2052 = vtanh.f32 %v2692_v13  ;;  %v2045_v58 = vpop.eup %2044  ;;  %v674_v1 = vmul.f32 %v2661_v21, %v647_v56  ;;  %v593_v29 = vadd.f32 1.0, %v2043_v43 }
 0x144   :  { %2054 = vtanh.f32 %v573_v2  ;;  %v2729_v48 = vpop.eup %2046  ;;  %v675_v27 = vmul.f32 %v2661_v21, %v648_v38  ;;  %v635_v22 = vmul.f32 %v2659_v20, %v457_v47  ;;  %v636_v60 = vmul.f32 %v2659_v20, %v483_v0 }
 0x145   :  { %v570_v52 = vmul.f32 0.5, %v2713_v39  ;;  %v531_v61 = vpop.f32.mrf.mxu3  ;;  %2056 = vtanh.f32 %v457_v47  ;;  %v2736_v49 = vpop.eup %2048  ;;  %v2743_v41 = vmul.f32 %v2045_v58, %v2715_v19  ;;  %v605_v47 = vmul.f32 0.5, %v593_v29 }
 0x146   :  { %v2727_v3 = vadd.f32 %v531_v61, %v2655_v26  ;;  %2058 = vtanh.f32 %v567_v37  ;;  %v604_v26 = vmul.f32 0.5, %v592_v14  ;;  %v686_v2 = vadd.f32 %v674_v1, %v635_v22  ;;  %v2747_v37 = vpop.permute.xlu0 %692 }
 0x147   :  { %2060 = vtanh.f32 %v483_v0  ;;  %v687_v38 = vadd.f32 %v675_v27, %v636_v60  ;;  %v2752_v0 = vmul.f32 %v2657_v59, %v2713_v39  ;;  %v705_v22 = vmul.f32 %v2747_v37, %v600_v6 }
 0x148   :  { %v571_v31 = vmul.f32 0.5, %v2727_v3  ;;  %v2051_v34 = vpop.eup %2050  ;;  %2062 = vtanh.f32 %v570_v52  ;;  %v709_v1 = vmul.f32 %v2676_v50, %v604_v26  ;;  %v601_v60 = vmul.f32 0.5, %v2705_v36 }
 0x149   :  { %v2745_v56 = vpop.eup %2052  ;;  %v596_v9 = vadd.f32 1.0, %v2051_v34  ;;  %v2765_v6 = vmul.f32 %v2657_v59, %v2727_v3 }
 0x14a   :  { %2064 = vtanh.f32 %v571_v31  ;;  %v508_v53 = vpop.f32.mrf.mxu2  ;;  %v2055_v43 = vpop.eup %2054  ;;  %v645_v31 = vmax.f32 %v2713_v39, 0.0  ;;  %v706_v59 = vmul.f32 %v2747_v37, %v601_v60 }
 0x14b   :  { %2066 = vtanh.f32 %v2713_v39  ;;  %v509_v14 = vadd.f32 %v508_v53, %v2653_v7  ;;  %v2057_v52 = vpop.eup %2056  ;;  %v608_v61 = vmul.f32 0.5, %v596_v9  ;;  %v597_v58 = vadd.f32 1.0, %v2055_v43 }
 0x14c   :  { %v2059_v29 = vpop.eup %2058  ;;  %2068 = vtanh.f32 %v2727_v3  ;;  %v710_v43 = vmul.f32 %v2676_v50, %v605_v47  ;;  %v646_v39 = vmax.f32 %v2727_v3, 0.0  ;;  %v752_v16 = vmul.f32 %v2057_v52, %v2669_v28 }
 0x14d   :  { %v574_v27 = vmul.f32 0.5, %v509_v14  ;;  %v534_v34 = vpop.f32.mrf.mxu3  ;;  %v2061_v57 = vpop.eup %2060  ;;  %v609_v54 = vmul.f32 0.5, %v597_v58  ;;  %v713_v9 = vmul.f32 %v2667_v35, %v608_v61  ;;  %v649_v36 = vmax.f32 %v509_v14, 0.0 }
 0x14e   :  { %v535_v53 = vadd.f32 %v534_v34, %v2653_v7  ;;  %v2063_v26 = vpop.eup %2062  ;;  %v721_v58 = vadd.f32 %v709_v1, %v682_v5  ;;  %v717_v7 = vadd.f32 %v705_v22, %v2683_v32  ;;  %v753_v3 = vmul.f32 %v2061_v57, %v2669_v28 }
 0x14f   :  { %2070 = vtanh.f32 %v574_v27  ;;  %v725_v47 = vadd.f32 %v713_v9, %v686_v2  ;;  %v714_v61 = vmul.f32 %v2667_v35, %v609_v54  ;;  %v722_v27 = vadd.f32 %v710_v43, %v2723_v51 }
 0x150   :  { %v2065_v8 = vpop.eup %2064  ;;  %v575_v33 = vmul.f32 0.5, %v535_v53  ;;  %2072 = vtanh.f32 %v509_v14  ;;  %v594_v52 = vadd.f32 1.0, %v2063_v26  ;;  %v650_v40 = vmax.f32 %v535_v53, 0.0 }
 0x151   :  { %v2770_v34 = vpop.eup %2066  ;;  %v764_v5 = vadd.f32 %v752_v16, %v725_v47  ;;  %v726_v1 = vadd.f32 %v714_v61, %v687_v38  ;;  %v595_v32 = vadd.f32 1.0, %v2065_v8  ;;  %v676_v22 = vmul.f32 %v2661_v21, %v649_v36 }
 0x152   :  { %2074 = vtanh.f32 %v575_v33  ;;  %v2776_v23 = vpop.eup %2068  ;;  %v760_v2 = vadd.f32 %v2721_v4, %v721_v58  ;;  %v606_v9 = vmul.f32 0.5, %v594_v52  ;;  %v672_v54 = vmul.f32 %v2665_v30, %v645_v31 }
 0x153   :  { %2076 = vtanh.f32 %v535_v53  ;;  %786 = vmatpush.msra.mxu0 %v764_v5  ;;  %v765_v33 = vadd.f32 %v753_v3, %v726_v1  ;;  %v718_v51 = vadd.f32 %v706_v59, %v2690_v44  ;;  %v590_v57 = vadd.f32 1.0, %v2736_v49  ;;  %v2791_v44 = vld [vmem:[%s3265_s8] sm:$0xff] }
 0x154   :  { %v637_v16 = vmul.f32 %v2659_v20, %v509_v14  ;;  %v761_v8 = vadd.f32 %v2743_v41, %v722_v27  ;;  %v756_v38 = vadd.f32 %v2696_v18, %v717_v7  ;;  %v638_v4 = vmul.f32 %v2659_v20, %v535_v53 }
 0x155   :  { %v2071_v60 = vpop.eup %2070  ;;  %v677_v31 = vmul.f32 %v2661_v21, %v650_v40  ;;  %806 = vmatpush.msra.mxu1 %v765_v33  ;;  %787 = vmatpush.msra.mxu0 %v760_v2  ;;  %v607_v49 = vmul.f32 0.5, %v595_v32  ;;  %v602_v36 = vmul.f32 0.5, %v590_v57  ;;  %v711_v41 = vmul.f32 %v2676_v50, %v606_v9  ;;  %v1908_v57 = vld [vmem:[%s3261_s1 + $0x18] sm:$0xff] }
 0x156   :  { %v598_v43 = vadd.f32 1.0, %v2071_v60  ;;  %v2073_v26 = vpop.eup %2072  ;;  %v3278_v18 = vmax.f32 %v2680_v62, 0.0  ;;  %v591_v20 = vadd.f32 1.0, %v2059_v29  ;;  %v688_v53 = vadd.f32 %v676_v22, %v637_v16 }
 0x157   :  { %807 = vmatpush.msra.mxu1 %v761_v8  ;;  %788 = vmatpush.msra.mxu0 %v756_v38  ;;  %v757_v21 = vadd.f32 %v2699_v12, %v718_v51  ;;  %v673_v47 = vmul.f32 %v2665_v30, %v646_v39  ;;  %v684_v59 = vadd.f32 %v672_v54, %v2752_v0  ;;  %v3279_v30 = vmax.f32 %v2692_v13, 0.0  ;;  %v1909_v38 = vld [vmem:[%s3261_s1 + $0x20] sm:$0xff] }
 0x158   :  { %v2075_v58 = vpop.eup %2074  ;;  %v610_v14 = vmul.f32 0.5, %v598_v43  ;;  %v668_v7 = vmul.f32 %v2672_v10, %v3278_v18  ;;  %1900 = vmatmul.msk.f32.vlgmr.msra.gmra.mxu0 %vm423_vm1, %v2791_v44  ;;  %v707_v62 = vmul.f32 %v2747_v37, %v602_v36  ;;  %v603_v3 = vmul.f32 0.5, %v591_v20 }
 0x159   :  { %v599_v40 = vadd.f32 1.0, %v2075_v58  ;;  %v2077_v27 = vpop.eup %2076  ;;  %v689_v52 = vadd.f32 %v677_v31, %v638_v4  ;;  %808 = vmatpush.msra.mxu1 %v757_v21  ;;  %869 = vmatpush.msrb.mxu0 %v2570_v24  ;;  %v712_v12 = vmul.f32 %v2676_v50, %v607_v49  ;;  %v669_v39 = vmul.f32 %v2672_v10, %v3279_v30  ;;  %v1910_v31 = vld [vmem:[%s3261_s1 + $0x28] sm:$0xff]  ;;  %v2869_v58 = vpop.permute.xlu0 %956 }
 0x15a   :  { %v715_v61 = vmul.f32 %v2667_v35, %v610_v14  ;;  %1901 = vmatmul.msk.f32.vlgmr.msra.gmra.mxu1 %vm423_vm1, %v2791_v44  ;;  %v754_v0 = vmul.f32 %v2073_v26, %v2669_v28  ;;  %v723_v1 = vadd.f32 %v711_v41, %v684_v59  ;;  %v680_v32 = vadd.f32 %v668_v7, %v2709_v45  ;;  %v2871_v14 = vpop.permute.xlu1 %951  ;;  %v2873_v41 = vpop.permute.xlu2 %946 }
 0x15b   :  { %v611_v29 = vmul.f32 0.5, %v599_v40  ;;  %889 = vmatpush.msrb.mxu1 %v2579_v17  ;;  %870 = vmatpush.msrb.mxu0 %v2555_v55  ;;  %v685_v50 = vadd.f32 %v673_v47, %v2765_v6  ;;  %v708_v13 = vmul.f32 %v2747_v37, %v603_v3  ;;  %v755_v22 = vmul.f32 %v2077_v27, %v2669_v28  ;;  %v768_v55 = vld [vmem:[%s3266_s7] sm:$0xff] }
 0x15c   :  { %v727_v5 = vadd.f32 %v715_v61, %v688_v53  ;;  %v750_v2 = vmul.f32 %v2770_v34, %v2715_v19  ;;  %v719_v9 = vadd.f32 %v707_v62, %v680_v32  ;;  %v681_v45 = vadd.f32 %v669_v39, %v2733_v11 }
 0x15d   :  { %v716_v24 = vmul.f32 %v2667_v35, %v611_v29  ;;  %890 = vmatpush.msrb.mxu1 %v2560_v42  ;;  %871 = vmatpush.msrb.mxu0 %v2550_v46  ;;  %v724_v35 = vadd.f32 %v712_v12, %v685_v50  ;;  %v746_v28 = vmul.f32 %v2729_v48, %v2685_v15 }
 0x15e   :  { %v766_v10 = vadd.f32 %v754_v0, %v727_v5  ;;  %v762_v37 = vadd.f32 %v750_v2, %v723_v1  ;;  %v751_v42 = vmul.f32 %v2776_v23, %v2715_v19  ;;  %v720_v46 = vadd.f32 %v708_v13, %v681_v45  ;;  %v3281_v23 = vld [vmem:[#allocation2_spill] sm:$0xff]  ;;  %v3282_v19 = vld [vmem:[#allocation5_spill] sm:$0xff] }
 0x15f   :  { %v728_v17 = vadd.f32 %v716_v24, %v689_v52  ;;  %891 = vmatpush.msrb.mxu1 %v2601_v25  ;;  %v758_v34 = vadd.f32 %v746_v28, %v719_v9  ;;  %v747_v11 = vmul.f32 %v2745_v56, %v2685_v15  ;;  %v3280_v25 = vld [vmem:[#allocation3_spill] sm:$0xff]  ;;  %v3283_v15 = vld [vmem:[#allocation4_spill] sm:$0xff]  ;;  %v3284_v56 = vld [vmem:[#allocation6_spill] sm:$0xff] }
 0x160   :  { %826 = vmatpush.msra.mxu2 %v766_v10  ;;  %1904 = vmatmul.msk.f32.vlgmr.msrb.gmra.mxu0 %vm423_vm1, %v768_v55  ;;  %v763_v54 = vadd.f32 %v751_v42, %v724_v35 }
 0x161   :  { %v767_v6 = vadd.f32 %v755_v22, %v728_v17  ;;  %v759_v48 = vadd.f32 %v747_v11, %v720_v46  ;;  %v2875_v18 = vpop.permute.xlu0 %1160 }
 0x162   :  { %827 = vmatpush.msra.mxu2 %v762_v37  ;;  %1905 = vmatmul.msk.f32.vlgmr.msrb.gmra.mxu1 %vm423_vm1, %v768_v55  ;;  %v2877_v7 = vpop.permute.xlu1 %1199  ;;  %v2880_v21 = vpop.permute.xlu2 %1155 }
 0x163   :  { %846 = vmatpush.msra.mxu3 %v767_v6 }
 0x164   :  { %828 = vmatpush.msra.mxu2 %v758_v34 }
 0x165   :  { %847 = vmatpush.msra.mxu3 %v763_v54  ;;  %1902 = vmatmul.msk.f32.vlgmr.msra.gmra.mxu2 %vm423_vm1, %v2791_v44 }
 0x166   :  { %909 = vmatpush.msrb.mxu2 %v2594_v63 }
 0x167   :  { %848 = vmatpush.msra.mxu3 %v759_v48 }
 0x168   :  { %1903 = vmatmul.msk.f32.vlgmr.msra.gmra.mxu3 %vm423_vm1, %v2791_v44  ;;  %910 = vmatpush.msrb.mxu2 %v3280_v25 }
 0x169   :  { %929 = vmatpush.msrb.mxu3 %v3281_v23  ;;  %v2882_v61 = vpop.permute.xlu0 %1194 }
 0x16a   :  { %911 = vmatpush.msrb.mxu2 %v3282_v19  ;;  %v2885_v3 = vpop.permute.xlu1 %1238  ;;  %v2893_v32 = vpop.permute.xlu2 %1150 }
 0x16b   :  { %930 = vmatpush.msrb.mxu3 %v3283_v15 }
 0x16d   :  { %931 = vmatpush.msrb.mxu3 %v3284_v56  ;;  %1906 = vmatmul.msk.f32.vlgmr.msrb.gmra.mxu2 %vm423_vm1, %v768_v55 }
 0x170   :  { %1907 = vmatmul.msk.f32.vlgmr.msrb.gmra.mxu3 %vm423_vm1, %v768_v55 }
 0x171   :  { %v2895_v13 = vpop.permute.xlu0 %1189 }
 0x172   :  { %v2897_v2 = vpop.permute.xlu1 %1233 }
 0x1d5   :  { %v790_v60 = vpop.f32.mrf.mxu0 }
 0x1d7   :  { %v810_v63 = vpop.f32.mrf.mxu1 }
 0x1dd   :  { %v873_v33 = vpop.f32.mrf.mxu0 }
 0x1de   :  { %v874_v51 = vadd.f32 %v873_v33, %v790_v60 }
 0x1df   :  { %v893_v43 = vpop.f32.mrf.mxu1 }
 0x1e0   :  { %v894_v16 = vadd.f32 %v893_v43, %v810_v63  ;;  %983 = vmatpush.msra.mxu0 %v874_v51 }
 0x1e1   :  { %1914 = vmatmul.msk.f32.vlgmr.msra.gmra.mxu0 %vm57_vm0, %v1908_v57 }
 0x1e2   :  { %1009 = vmatpush.msra.mxu1 %v894_v16 }
 0x1e3   :  { %1917 = vmatmul.msk.f32.vlgmr.msra.gmra.mxu1 %vm57_vm0, %v1908_v57 }
 0x1e8   :  { %v830_v8 = vpop.f32.mrf.mxu2 }
 0x1e9   :  { %1915 = vmatmul.msk.f32.gmra.mxu0 %vm57_vm0, %v1909_v38 }
 0x1eb   :  { %v850_v26 = vpop.f32.mrf.mxu3  ;;  %1918 = vmatmul.msk.f32.gmra.mxu1 %vm57_vm0, %v1909_v38 }
 0x1f0   :  { %v913_v4 = vpop.f32.mrf.mxu2 }
 0x1f1   :  { %v914_v44 = vadd.f32 %v913_v4, %v830_v8  ;;  %1916 = vmatmul.msk.f32.gmra.mxu0 %vm57_vm0, %v1910_v31  ;;  %v2915_v8 = vpop.permute.xlu2 %1277 }
 0x1f3   :  { %v933_v49 = vpop.f32.mrf.mxu3  ;;  %1035 = vmatpush.msra.mxu2 %v914_v44  ;;  %1919 = vmatmul.msk.f32.gmra.mxu1 %vm57_vm0, %v1910_v31 }
 0x1f4   :  { %v934_v36 = vadd.f32 %v933_v49, %v850_v26  ;;  %1920 = vmatmul.msk.f32.vlgmr.msra.gmra.mxu2 %vm57_vm0, %v1908_v57  ;;  %v2922_v49 = vpop.permute.xlu0 %1228 }
 0x1f6   :  { %1061 = vmatpush.msra.mxu3 %v934_v36 }
 0x1f7   :  { %1923 = vmatmul.msk.f32.vlgmr.msra.gmra.mxu3 %vm57_vm0, %v1908_v57 }
 0x1fc   :  { %1921 = vmatmul.msk.f32.gmra.mxu2 %vm57_vm0, %v1909_v38 }
 0x1ff   :  { %1924 = vmatmul.msk.f32.gmra.mxu3 %vm57_vm0, %v1909_v38 }
 0x204   :  { %1922 = vmatmul.msk.f32.gmra.mxu2 %vm57_vm0, %v1910_v31 }
 0x207   :  { %1925 = vmatmul.msk.f32.gmra.mxu3 %vm57_vm0, %v1910_v31 }
 0x25e   :  { %v985_v20 = vpop.f32.mrf.mxu0 }
 0x25f   :  { %v986_v40 = vadd.f32 %v985_v20, %v2873_v41 }
 0x260   :  { %v1011_v53 = vpop.f32.mrf.mxu1 }
 0x261   :  { %v1100_v59 = vmul.f32 0.5, %v986_v40  ;;  %v1012_v27 = vadd.f32 %v1011_v53, %v2873_v41  ;;  %v1175_v0 = vmax.f32 %v986_v40, 0.0  ;;  %v1163_v6 = vmul.f32 %v2893_v32, %v986_v40 }
 0x263   :  { %2078 = vtanh.f32 %v1100_v59  ;;  %v1101_v30 = vmul.f32 0.5, %v1012_v27  ;;  %v1176_v10 = vmax.f32 %v1012_v27, 0.0  ;;  %v1202_v35 = vmul.f32 %v2895_v13, %v1175_v0 }
 0x264   :  { %v1164_v11 = vmul.f32 %v2893_v32, %v1012_v27 }
 0x265   :  { %v1203_v46 = vmul.f32 %v2895_v13, %v1176_v10  ;;  %v1214_v23 = vadd.f32 %v1202_v35, %v1163_v6 }
 0x266   :  { %v988_v47 = vpop.f32.mrf.mxu0 }
 0x267   :  { %v989_v62 = vadd.f32 %v988_v47, %v2871_v14  ;;  %v2913_v43 = vadd.f32 %v1203_v46, %v1164_v11  ;;  %v2929_v47 = vpop.permute.xlu1 %1272 }
 0x268   :  { %v1014_v29 = vpop.f32.mrf.mxu1 }
 0x269   :  { %v1104_v52 = vmul.f32 0.5, %v989_v62  ;;  %v2889_v12 = vadd.f32 %v1014_v29, %v2871_v14  ;;  %v2079_v50 = vpop.eup %2078  ;;  %v1179_v55 = vmax.f32 %v989_v62, 0.0  ;;  %v1167_v51 = vmul.f32 %v2880_v21, %v989_v62 }
 0x26a   :  { %v1124_v37 = vadd.f32 1.0, %v2079_v50 }
 0x26b   :  { %v1105_v39 = vmul.f32 0.5, %v2889_v12  ;;  %2080 = vtanh.f32 %v1104_v52  ;;  %v1206_v25 = vmul.f32 %v2882_v61, %v1179_v55  ;;  %v1180_v15 = vmax.f32 %v2889_v12, 0.0 }
 0x26c   :  { %v1136_v63 = vmul.f32 0.5, %v1124_v37  ;;  %v1168_v38 = vmul.f32 %v2880_v21, %v2889_v12 }
 0x26d   :  { %2082 = vtanh.f32 %v1105_v39  ;;  %v1218_v53 = vadd.f32 %v1206_v25, %v1167_v51 }
 0x26e   :  { %v991_v5 = vpop.f32.mrf.mxu0  ;;  %2084 = vtanh.f32 %v1101_v30  ;;  %v1241_v29 = vmul.f32 %v2922_v49, %v1136_v63 }
 0x26f   :  { %v992_v1 = vadd.f32 %v991_v5, %v2869_v58  ;;  %2086 = vtanh.f32 %v986_v40 }
 0x270   :  { %v1017_v24 = vpop.f32.mrf.mxu1  ;;  %v1253_v63 = vadd.f32 %v1241_v29, %v1214_v23 }
 0x271   :  { %v1108_v22 = vmul.f32 0.5, %v992_v1  ;;  %v2900_v9 = vadd.f32 %v1017_v24, %v2869_v58  ;;  %v2081_v17 = vpop.eup %2080  ;;  %v1183_v48 = vmax.f32 %v992_v1, 0.0  ;;  %v1171_v52 = vmul.f32 %v2875_v18, %v992_v1 }
 0x272   :  { %v1128_v54 = vadd.f32 1.0, %v2081_v17 }
 0x273   :  { %2088 = vtanh.f32 %v1108_v22  ;;  %v1109_v45 = vmul.f32 0.5, %v2900_v9  ;;  %v2083_v28 = vpop.eup %2082  ;;  %v1184_v4 = vmax.f32 %v2900_v9, 0.0  ;;  %v1210_v36 = vmul.f32 %v2877_v7, %v1183_v48 }
 0x274   :  { %2090 = vtanh.f32 %v989_v62  ;;  %v2085_v34 = vpop.eup %2084  ;;  %v1129_v60 = vadd.f32 1.0, %v2083_v28  ;;  %v1140_v31 = vmul.f32 0.5, %v1128_v54  ;;  %v1172_v37 = vmul.f32 %v2875_v18, %v2900_v9 }
 0x275   :  { %2092 = vtanh.f32 %v1012_v27  ;;  %v2908_v19 = vpop.eup %2086  ;;  %v1125_v57 = vadd.f32 1.0, %v2085_v34  ;;  %v1207_v27 = vmul.f32 %v2882_v61, %v1180_v15  ;;  %v1211_v24 = vmul.f32 %v2877_v7, %v1184_v4 }
 0x276   :  { %2094 = vtanh.f32 %v1109_v45  ;;  %v1141_v62 = vmul.f32 0.5, %v1129_v60  ;;  %v1245_v22 = vmul.f32 %v2897_v2, %v1140_v31  ;;  %v1222_v55 = vadd.f32 %v1210_v36, %v1171_v52  ;;  %v2983_v52 = vld [vmem:[%s3264_s4 + $0x18] sm:$0xff] }
 0x277   :  { %v1037_v42 = vpop.f32.mrf.mxu2  ;;  %2096 = vtanh.f32 %v2889_v12  ;;  %v1137_v5 = vmul.f32 0.5, %v1125_v57 }
 0x278   :  { %2098 = vtanh.f32 %v992_v1  ;;  %v2927_v20 = vadd.f32 %v1037_v42, %v2873_v41  ;;  %v1219_v42 = vadd.f32 %v1207_v27, %v1168_v38  ;;  %v1246_v46 = vmul.f32 %v2897_v2, %v1141_v62 }
 0x279   :  { %v2089_v33 = vpop.eup %2088  ;;  %2100 = vtanh.f32 %v2900_v9  ;;  %v1242_v25 = vmul.f32 %v2922_v49, %v1137_v5  ;;  %v1257_v9 = vadd.f32 %v1245_v22, %v1218_v53 }
 0x27a   :  { %v1063_v56 = vpop.f32.mrf.mxu3  ;;  %v2091_v16 = vpop.eup %2090  ;;  %v1132_v26 = vadd.f32 1.0, %v2089_v33  ;;  %v1102_v1 = vmul.f32 0.5, %v2927_v20  ;;  %v1177_v22 = vmax.f32 %v2927_v20, 0.0 }
 0x27b   :  { %v2920_v44 = vpop.eup %2092  ;;  %v1284_v39 = vmul.f32 %v2091_v16, %v2929_v47  ;;  %v2943_v45 = vadd.f32 %v1063_v56, %v2873_v41  ;;  %v1223_v41 = vadd.f32 %v1211_v24, %v1172_v37  ;;  %v2957_v33 = vpop.permute.xlu2 %1267  ;;  %v1258_v16 = vadd.f32 %v1246_v46, %v1219_v42  ;;  %v3009_v46 = vld [vmem:[%s3264_s4 + $0x20] sm:$0xff] }
 0x27c   :  { %v2095_v40 = vpop.eup %2094  ;;  %v1144_v59 = vmul.f32 0.5, %v1132_v26  ;;  %v1280_v4 = vmul.f32 %v2908_v19, %v2957_v33  ;;  %v1254_v53 = vadd.f32 %v1242_v25, %v2913_v43  ;;  %v1281_v29 = vmul.f32 %v2920_v44, %v2957_v33 }
 0x27d   :  { %v1133_v12 = vadd.f32 1.0, %v2095_v40  ;;  %v2097_v0 = vpop.eup %2096  ;;  %v1103_v56 = vmul.f32 0.5, %v2943_v45  ;;  %v2969_v36 = vadd.f32 %v1284_v39, %v1257_v9  ;;  %v1204_v9 = vmul.f32 %v2895_v13, %v1177_v22 }
 0x27e   :  { %v1249_v10 = vmul.f32 %v2885_v3, %v1144_v59  ;;  %v2099_v17 = vpop.eup %2098  ;;  %v1285_v26 = vmul.f32 %v2097_v0, %v2929_v47  ;;  %v2976_v19 = vadd.f32 %v1280_v4, %v1253_v63 }
 0x27f   :  { %v1040_v30 = vpop.f32.mrf.mxu2  ;;  %v1145_v35 = vmul.f32 0.5, %v1133_v12  ;;  %v2101_v34 = vpop.eup %2100  ;;  %v1288_v15 = vmul.f32 %v2099_v17, %v2915_v8  ;;  %v1178_v17 = vmax.f32 %v2943_v45, 0.0 }
 0x280   :  { %v2937_v50 = vadd.f32 %v1040_v30, %v2871_v14  ;;  %v1261_v11 = vadd.f32 %v1249_v10, %v1222_v55  ;;  %v1289_v57 = vmul.f32 %v2101_v34, %v2915_v8  ;;  %v2974_v27 = vadd.f32 %v1285_v26, %v1258_v16 }
 0x281   :  { %v1250_v48 = vmul.f32 %v2885_v3, %v1145_v35  ;;  %v2988_v30 = vadd.f32 %v1281_v29, %v1254_v53  ;;  %v1165_v35 = vmul.f32 %v2893_v32, %v2927_v20 }
 0x282   :  { %v1106_v28 = vmul.f32 0.5, %v2937_v50  ;;  %v1066_v6 = vpop.f32.mrf.mxu3  ;;  %v1181_v0 = vmax.f32 %v2937_v50, 0.0 }
 0x283   :  { %v2950_v54 = vadd.f32 %v1066_v6, %v2871_v14  ;;  %v2959_v14 = vadd.f32 %v1288_v15, %v1261_v11  ;;  %v1262_v51 = vadd.f32 %v1250_v48, %v1223_v41  ;;  %v1169_v41 = vmul.f32 %v2880_v21, %v2937_v50 }
 0x284   :  { %2102 = vtanh.f32 %v1106_v28  ;;  %v1208_v34 = vmul.f32 %v2882_v61, %v1181_v0  ;;  %v1216_v0 = vadd.f32 %v1204_v9, %v1165_v35 }
 0x285   :  { %2104 = vtanh.f32 %v1102_v1  ;;  %v1107_v60 = vmul.f32 0.5, %v2950_v54  ;;  %1349 = vmatpush.msrb.mxu0 %v2959_v14  ;;  %v2966_v31 = vadd.f32 %v1289_v57, %v1262_v51  ;;  %v1166_v1 = vmul.f32 %v2893_v32, %v2943_v45 }
 0x286   :  { %v1182_v6 = vmax.f32 %v2950_v54, 0.0 }
 0x287   :  { %2106 = vtanh.f32 %v1107_v60  ;;  %v1043_v38 = vpop.f32.mrf.mxu2  ;;  %1375 = vmatpush.msrb.mxu1 %v2966_v31  ;;  %1350 = vmatpush.msrb.mxu0 %v2969_v36 }
 0x288   :  { %v1044_v23 = vadd.f32 %v1043_v38, %v2869_v58  ;;  %2108 = vtanh.f32 %v1103_v56  ;;  %v1205_v56 = vmul.f32 %v2895_v13, %v1178_v17  ;;  %v1209_v26 = vmul.f32 %v2882_v61, %v1182_v6 }
 0x289   :  { %1376 = vmatpush.msrb.mxu1 %v2974_v27  ;;  %1351 = vmatpush.msrb.mxu0 %v2976_v19 }
 0x28a   :  { %v2103_v40 = vpop.eup %2102  ;;  %v1110_v59 = vmul.f32 0.5, %v1044_v23  ;;  %v1069_v62 = vpop.f32.mrf.mxu3  ;;  %1944 = vmatmul.msk.f32.vlgmr.msrb.gmra.mxu0 %vm423_vm1, %v2983_v52  ;;  %v1185_v24 = vmax.f32 %v1044_v23, 0.0  ;;  %v1173_v51 = vmul.f32 %v2875_v18, %v1044_v23 }
 0x28b   :  { %v2105_v43 = vpop.eup %2104  ;;  %v1070_v12 = vadd.f32 %v1069_v62, %v2869_v58  ;;  %v1130_v44 = vadd.f32 1.0, %v2103_v40  ;;  %1377 = vmatpush.msrb.mxu1 %v2988_v30  ;;  %v1170_v62 = vmul.f32 %v2880_v21, %v2950_v54 }
 0x28c   :  { %2110 = vtanh.f32 %v1110_v59  ;;  %1947 = vmatmul.msk.f32.vlgmr.msrb.gmra.mxu1 %vm423_vm1, %v2983_v52  ;;  %v1126_v10 = vadd.f32 1.0, %v2105_v43  ;;  %v1212_v25 = vmul.f32 %v2877_v7, %v1185_v24  ;;  %v1940_v24 = vld [vmem:[%s3264_s4 + $0x28] sm:$0xff] }
 0x28d   :  { %v2107_v39 = vpop.eup %2106  ;;  %2112 = vtanh.f32 %v2927_v20  ;;  %v1111_v5 = vmul.f32 0.5, %v1070_v12  ;;  %v1142_v37 = vmul.f32 0.5, %v1130_v44  ;;  %v1186_v42 = vmax.f32 %v1070_v12, 0.0 }
 0x28e   :  { %2114 = vtanh.f32 %v2943_v45  ;;  %v2109_v58 = vpop.eup %2108  ;;  %v1131_v55 = vadd.f32 1.0, %v2107_v39  ;;  %v1138_v32 = vmul.f32 0.5, %v1126_v10  ;;  %v1224_v13 = vadd.f32 %v1212_v25, %v1173_v51 }
 0x28f   :  { %2116 = vtanh.f32 %v1111_v5  ;;  %v1127_v11 = vadd.f32 1.0, %v2109_v58  ;;  %v1247_v57 = vmul.f32 %v2897_v2, %v1142_v37  ;;  %v1174_v43 = vmul.f32 %v2875_v18, %v1070_v12 }
 0x290   :  { %2118 = vtanh.f32 %v1044_v23  ;;  %v1143_v15 = vmul.f32 0.5, %v1131_v55  ;;  %v1220_v23 = vadd.f32 %v1208_v34, %v1169_v41  ;;  %v1243_v59 = vmul.f32 %v2922_v49, %v1138_v32 }
 0x291   :  { %2120 = vtanh.f32 %v2937_v50  ;;  %v1213_v50 = vmul.f32 %v2877_v7, %v1186_v42  ;;  %v1139_v4 = vmul.f32 0.5, %v1127_v11  ;;  %v1221_v22 = vadd.f32 %v1209_v26, %v1170_v62 }
 0x292   :  { %v2111_v28 = vpop.eup %2110  ;;  %2122 = vtanh.f32 %v1070_v12  ;;  %1945 = vmatmul.msk.f32.gmra.mxu0 %vm423_vm1, %v3009_v46  ;;  %v1248_v7 = vmul.f32 %v2897_v2, %v1143_v15  ;;  %v1259_v44 = vadd.f32 %v1247_v57, %v1220_v23  ;;  %v1255_v12 = vadd.f32 %v1243_v59, %v1216_v0 }
 0x293   :  { %v2113_v48 = vpop.eup %2112  ;;  %v1134_v20 = vadd.f32 1.0, %v2111_v28  ;;  %2124 = vtanh.f32 %v2950_v54  ;;  %v1225_v58 = vadd.f32 %v1213_v50, %v1174_v43  ;;  %v1244_v21 = vmul.f32 %v2922_v49, %v1139_v4 }
 0x294   :  { %v2115_v45 = vpop.eup %2114  ;;  %1948 = vmatmul.msk.f32.gmra.mxu1 %vm423_vm1, %v3009_v46  ;;  %v1260_v35 = vadd.f32 %v1248_v7, %v1221_v22  ;;  %v1217_v37 = vadd.f32 %v1205_v56, %v1166_v1 }
 0x295   :  { %v2117_v60 = vpop.eup %2116  ;;  %v1146_v63 = vmul.f32 0.5, %v1134_v20  ;;  %v1283_v34 = vmul.f32 %v2115_v45, %v2957_v33 }
 0x296   :  { %v2119_v16 = vpop.eup %2118  ;;  %v1135_v38 = vadd.f32 1.0, %v2117_v60  ;;  %v1256_v42 = vadd.f32 %v1244_v21, %v1217_v37 }
 0x297   :  { %v2121_v53 = vpop.eup %2120  ;;  %v1251_v40 = vmul.f32 %v2885_v3, %v1146_v63  ;;  %v1290_v5 = vmul.f32 %v2119_v16, %v2915_v8 }
 0x298   :  { %v1147_v29 = vmul.f32 0.5, %v1135_v38  ;;  %v2123_v61 = vpop.eup %2122  ;;  %v1286_v2 = vmul.f32 %v2121_v53, %v2929_v47  ;;  %v3060_v11 = vadd.f32 %v1283_v34, %v1256_v42 }
 0x299   :  { %v1263_v39 = vadd.f32 %v1251_v40, %v1224_v13  ;;  %v2125_v54 = vpop.eup %2124  ;;  %v1291_v55 = vmul.f32 %v2123_v61, %v2915_v8 }
 0x29a   :  { %v1252_v10 = vmul.f32 %v2885_v3, %v1147_v29  ;;  %1946 = vmatmul.msk.f32.gmra.mxu0 %vm423_vm1, %v1940_v24  ;;  %v3044_v28 = vadd.f32 %v1286_v2, %v1259_v44  ;;  %v1282_v3 = vmul.f32 %v2113_v48, %v2957_v33  ;;  %v1287_v6 = vmul.f32 %v2125_v54, %v2929_v47  ;;  %v3073_v47 = vpop.permute.xlu0 %1324  ;;  %v3075_v33 = vpop.permute.xlu1 %1319 }
 0x29b   :  { %v3038_v18 = vadd.f32 %v1290_v5, %v1263_v39  ;;  %v3077_v48 = vpop.permute.xlu2 %1314 }
 0x29c   :  { %v1264_v17 = vadd.f32 %v1252_v10, %v1225_v58  ;;  %1949 = vmatmul.msk.f32.gmra.mxu1 %vm423_vm1, %v1940_v24  ;;  %v3052_v8 = vadd.f32 %v1282_v3, %v1255_v12  ;;  %v3055_v1 = vadd.f32 %v1287_v6, %v1260_v35 }
 0x29d   :  { %1401 = vmatpush.msrb.mxu2 %v3038_v18 }
 0x29e   :  { %v3047_v49 = vadd.f32 %v1291_v55, %v1264_v17 }
 0x29f   :  { %1402 = vmatpush.msrb.mxu2 %v3044_v28 }
 0x2a0   :  { %1427 = vmatpush.msrb.mxu3 %v3047_v49 }
 0x2a1   :  { %1403 = vmatpush.msrb.mxu2 %v3052_v8 }
 0x2a2   :  { %1428 = vmatpush.msrb.mxu3 %v3055_v1  ;;  %1950 = vmatmul.msk.f32.vlgmr.msrb.gmra.mxu2 %vm423_vm1, %v2983_v52  ;;  %v3079_v25 = vpop.permute.xlu0 %1528  ;;  %v3081_v32 = vpop.permute.xlu1 %1567 }
 0x2a3   :  { %v3083_v45 = vpop.permute.xlu2 %1523 }
 0x2a4   :  { %1429 = vmatpush.msrb.mxu3 %v3060_v11 }
 0x2a5   :  { %1953 = vmatmul.msk.f32.vlgmr.msrb.gmra.mxu3 %vm423_vm1, %v2983_v52 }
 0x2aa   :  { %1951 = vmatmul.msk.f32.gmra.mxu2 %vm423_vm1, %v3009_v46  ;;  %v3088_v60 = vpop.permute.xlu0 %1562  ;;  %v3094_v50 = vpop.permute.xlu1 %1606 }
 0x2ab   :  { %v3096_v4 = vpop.permute.xlu2 %1518 }
 0x2ad   :  { %1954 = vmatmul.msk.f32.gmra.mxu3 %vm423_vm1, %v3009_v46 }
 0x2b2   :  { %1952 = vmatmul.msk.f32.gmra.mxu2 %vm423_vm1, %v1940_v24  ;;  %v3100_v29 = vpop.permute.xlu0 %1557  ;;  %v3102_v10 = vpop.permute.xlu1 %1601 }
 0x2b3   :  { %v3108_v35 = vpop.permute.xlu2 %1645 }
 0x2b5   :  { %1955 = vmatmul.msk.f32.gmra.mxu3 %vm423_vm1, %v1940_v24 }
 0x307   :  { %v1353_v20 = vpop.f32.mrf.mxu0 }
 0x308   :  { %v1354_v46 = vadd.f32 %v1353_v20, %v3077_v48 }
 0x309   :  { %v1379_v52 = vpop.f32.mrf.mxu1 }
 0x30a   :  { %v1380_v9 = vadd.f32 %v1379_v52, %v3077_v48  ;;  %v1468_v63 = vmul.f32 0.5, %v1354_v46  ;;  %v1543_v43 = vmax.f32 %v1354_v46, 0.0  ;;  %v1531_v2 = vmul.f32 %v3096_v4, %v1354_v46 }
 0x30c   :  { %v1469_v16 = vmul.f32 0.5, %v1380_v9  ;;  %v1544_v7 = vmax.f32 %v1380_v9, 0.0  ;;  %v1570_v21 = vmul.f32 %v3100_v29, %v1543_v43  ;;  %v1532_v12 = vmul.f32 %v3096_v4, %v1380_v9  ;;  %v3119_v43 = vpop.permute.xlu0 %1596 }
 0x30e   :  { %v1571_v54 = vmul.f32 %v3100_v29, %v1544_v7 }
 0x30f   :  { %v1356_v41 = vpop.f32.mrf.mxu0 }
 0x310   :  { %v1357_v15 = vadd.f32 %v1356_v41, %v3075_v33 }
 0x311   :  { %v1382_v56 = vpop.f32.mrf.mxu1 }
 0x312   :  { %v1472_v51 = vmul.f32 0.5, %v1357_v15  ;;  %v3091_v57 = vadd.f32 %v1382_v56, %v3075_v33  ;;  %v1547_v44 = vmax.f32 %v1357_v15, 0.0 }
 0x314   :  { %2126 = vtanh.f32 %v1472_v51  ;;  %v1473_v38 = vmul.f32 0.5, %v3091_v57  ;;  %v1548_v37 = vmax.f32 %v3091_v57, 0.0  ;;  %v1574_v42 = vmul.f32 %v3088_v60, %v1547_v44 }
 0x315   :  { %2128 = vtanh.f32 %v1468_v63  ;;  %v1582_v51 = vadd.f32 %v1570_v21, %v1531_v2 }
 0x316   :  { %2130 = vtanh.f32 %v1473_v38 }
 0x317   :  { %v1359_v26 = vpop.f32.mrf.mxu0  ;;  %2132 = vtanh.f32 %v1469_v16  ;;  %v1583_v16 = vadd.f32 %v1571_v54, %v1532_v12 }
 0x318   :  { %v1360_v53 = vadd.f32 %v1359_v26, %v3073_v47 }
 0x319   :  { %v1385_v13 = vpop.f32.mrf.mxu1 }
 0x31a   :  { %v2127_v40 = vpop.eup %2126  ;;  %v1476_v23 = vmul.f32 0.5, %v1360_v53  ;;  %v1386_v59 = vadd.f32 %v1385_v13, %v3073_v47  ;;  %v1551_v58 = vmax.f32 %v1360_v53, 0.0  ;;  %v1539_v13 = vmul.f32 %v3079_v25, %v1360_v53 }
 0x31b   :  { %v2129_v62 = vpop.eup %2128  ;;  %v1496_v5 = vadd.f32 1.0, %v2127_v40 }
 0x31c   :  { %2134 = vtanh.f32 %v1476_v23  ;;  %v2131_v61 = vpop.eup %2130  ;;  %v1477_v39 = vmul.f32 0.5, %v1386_v59  ;;  %v1492_v24 = vadd.f32 1.0, %v2129_v62  ;;  %v1552_v3 = vmax.f32 %v1386_v59, 0.0 }
 0x31d   :  { %2136 = vtanh.f32 %v1354_v46  ;;  %v2133_v0 = vpop.eup %2132  ;;  %v1497_v22 = vadd.f32 1.0, %v2131_v61  ;;  %v1508_v17 = vmul.f32 0.5, %v1496_v5  ;;  %v1578_v41 = vmul.f32 %v3081_v32, %v1551_v58 }
 0x31e   :  { %2138 = vtanh.f32 %v1380_v9  ;;  %v1493_v34 = vadd.f32 1.0, %v2133_v0  ;;  %v1504_v46 = vmul.f32 0.5, %v1492_v24  ;;  %v1535_v9 = vmul.f32 %v3083_v45, %v1357_v15 }
 0x31f   :  { %2140 = vtanh.f32 %v1477_v39  ;;  %v1509_v63 = vmul.f32 0.5, %v1497_v22  ;;  %v1613_v23 = vmul.f32 %v3102_v10, %v1508_v17  ;;  %v1579_v61 = vmul.f32 %v3081_v32, %v1552_v3  ;;  %v3133_v3 = vpop.permute.xlu1 %1640 }
 0x320   :  { %2142 = vtanh.f32 %v1360_v53  ;;  %v1505_v39 = vmul.f32 0.5, %v1493_v34  ;;  %v1590_v44 = vadd.f32 %v1578_v41, %v1539_v13  ;;  %v1586_v58 = vadd.f32 %v1574_v42, %v1535_v9 }
 0x321   :  { %2144 = vtanh.f32 %v1357_v15  ;;  %v1575_v15 = vmul.f32 %v3088_v60, %v1548_v37  ;;  %v1609_v24 = vmul.f32 %v3119_v43, %v1504_v46  ;;  %v1536_v53 = vmul.f32 %v3083_v45, %v3091_v57 }
 0x322   :  { %v2135_v55 = vpop.eup %2134  ;;  %2146 = vtanh.f32 %v1386_v59  ;;  %v1540_v21 = vmul.f32 %v3079_v25, %v1386_v59  ;;  %v1614_v54 = vmul.f32 %v3102_v10, %v1509_v63  ;;  %v1625_v37 = vadd.f32 %v1613_v23, %v1586_v58 }
 0x323   :  { %v2137_v20 = vpop.eup %2136  ;;  %v1500_v52 = vadd.f32 1.0, %v2135_v55  ;;  %2148 = vtanh.f32 %v3091_v57  ;;  %v1587_v57 = vadd.f32 %v1575_v15, %v1536_v53  ;;  %v1610_v41 = vmul.f32 %v3119_v43, %v1505_v39 }
 0x324   :  { %v3113_v56 = vpop.eup %2138  ;;  %v1591_v42 = vadd.f32 %v1579_v61, %v1540_v21  ;;  %v1621_v63 = vadd.f32 %v1609_v24, %v1582_v51  ;;  %v3164_v21 = vld [vmem:[%s3265_s8 + $0x8] sm:$0xff] }
 0x325   :  { %v1405_v6 = vpop.f32.mrf.mxu2  ;;  %v2141_v38 = vpop.eup %2140  ;;  %v1512_v26 = vmul.f32 0.5, %v1500_v52 }
 0x326   :  { %v2143_v62 = vpop.eup %2142  ;;  %v1501_v7 = vadd.f32 1.0, %v2141_v38  ;;  %v3130_v12 = vadd.f32 %v1405_v6, %v3077_v48  ;;  %v3141_v38 = vpop.permute.xlu2 %1635 }
 0x327   :  { %v2145_v5 = vpop.eup %2144  ;;  %v1617_v0 = vmul.f32 %v3094_v50, %v1512_v26  ;;  %v1656_v55 = vmul.f32 %v2143_v62, %v3108_v35  ;;  %v1626_v62 = vadd.f32 %v1614_v54, %v1587_v57 }
 0x328   :  { %v1431_v40 = vpop.f32.mrf.mxu3  ;;  %v1513_v22 = vmul.f32 0.5, %v1501_v7  ;;  %v2147_v2 = vpop.eup %2146  ;;  %v1652_v6 = vmul.f32 %v2145_v5, %v3133_v3  ;;  %v1470_v7 = vmul.f32 0.5, %v3130_v12 }
 0x329   :  { %v1629_v17 = vadd.f32 %v1617_v0, %v1590_v44  ;;  %v2149_v59 = vpop.eup %2148  ;;  %v3144_v26 = vadd.f32 %v1431_v40, %v3077_v48  ;;  %v1657_v23 = vmul.f32 %v2147_v2, %v3108_v35  ;;  %v1648_v44 = vmul.f32 %v2137_v20, %v3141_v38 }
 0x32a   :  { %v1618_v52 = vmul.f32 %v3094_v50, %v1513_v22  ;;  %v1664_v39 = vadd.f32 %v1652_v6, %v1625_v37  ;;  %v1653_v48 = vmul.f32 %v2149_v59, %v3133_v3  ;;  %v1622_v40 = vadd.f32 %v1610_v41, %v1583_v16 }
 0x32b   :  { %v1668_v9 = vadd.f32 %v1656_v55, %v1629_v17  ;;  %v1660_v0 = vadd.f32 %v1648_v44, %v1621_v63  ;;  %v1471_v58 = vmul.f32 0.5, %v3144_v26  ;;  %v1649_v22 = vmul.f32 %v3113_v56, %v3141_v38 }
 0x32c   :  { %v1630_v13 = vadd.f32 %v1618_v52, %v1591_v42  ;;  %v1665_v53 = vadd.f32 %v1653_v48, %v1626_v62  ;;  %v1546_v52 = vmax.f32 %v3144_v26, 0.0  ;;  %v1533_v41 = vmul.f32 %v3096_v4, %v3130_v12 }
 0x32d   :  { %v1408_v34 = vpop.f32.mrf.mxu2  ;;  %1692 = vmatpush.msra.mxu0 %v1668_v9 }
 0x32e   :  { %v3138_v46 = vadd.f32 %v1408_v34, %v3075_v33  ;;  %v1669_v5 = vadd.f32 %v1657_v23, %v1630_v13  ;;  %v1545_v34 = vmax.f32 %v3130_v12, 0.0  ;;  %v1573_v44 = vmul.f32 %v3100_v29, %v1546_v52 }
 0x32f   :  { %1693 = vmatpush.msra.mxu0 %v1664_v39 }
 0x330   :  { %v1474_v61 = vmul.f32 0.5, %v3138_v46  ;;  %v1434_v15 = vpop.f32.mrf.mxu3  ;;  %1712 = vmatpush.msra.mxu1 %v1669_v5  ;;  %v1549_v37 = vmax.f32 %v3138_v46, 0.0  ;;  %v1572_v39 = vmul.f32 %v3100_v29, %v1545_v34 }
 0x331   :  { %v3151_v51 = vadd.f32 %v1434_v15, %v3075_v33  ;;  %1694 = vmatpush.msra.mxu0 %v1660_v0  ;;  %v1661_v33 = vadd.f32 %v1649_v22, %v1622_v40 }
 0x332   :  { %2150 = vtanh.f32 %v1474_v61  ;;  %1713 = vmatpush.msra.mxu1 %v1665_v53  ;;  %1970 = vmatmul.msk.f32.vlgmr.msra.gmra.mxu0 %vm423_vm1, %v3164_v21  ;;  %v1576_v13 = vmul.f32 %v3088_v60, %v1549_v37  ;;  %v1584_v37 = vadd.f32 %v1572_v39, %v1533_v41 }
 0x333   :  { %v1475_v24 = vmul.f32 0.5, %v3151_v51  ;;  %2152 = vtanh.f32 %v1470_v7  ;;  %1775 = vmatpush.msrb.mxu0 %v2959_v14  ;;  %v1550_v6 = vmax.f32 %v3151_v51, 0.0 }
 0x334   :  { %1714 = vmatpush.msra.mxu1 %v1661_v33 }
 0x335   :  { %2154 = vtanh.f32 %v1475_v24  ;;  %v1411_v20 = vpop.f32.mrf.mxu2  ;;  %1776 = vmatpush.msrb.mxu0 %v2969_v36  ;;  %1971 = vmatmul.msk.f32.vlgmr.msra.gmra.mxu1 %vm423_vm1, %v3164_v21  ;;  %v1577_v22 = vmul.f32 %v3088_v60, %v1550_v6 }
 0x336   :  { %v1412_v16 = vadd.f32 %v1411_v20, %v3073_v47  ;;  %2156 = vtanh.f32 %v1471_v58  ;;  %1795 = vmatpush.msrb.mxu1 %v2966_v31 }
 0x337   :  { %1777 = vmatpush.msrb.mxu0 %v2976_v19 }
 0x338   :  { %v2151_v56 = vpop.eup %2150  ;;  %v1478_v54 = vmul.f32 0.5, %v1412_v16  ;;  %v1437_v2 = vpop.f32.mrf.mxu3  ;;  %1796 = vmatpush.msrb.mxu1 %v2974_v27  ;;  %v1553_v19 = vmax.f32 %v1412_v16, 0.0  ;;  %v3181_v27 = vld [vmem:[%s3266_s7 + $0x8] sm:$0xff]  ;;  %v1541_v40 = vmul.f32 %v3079_v25, %v1412_v16 }
 0x339   :  { %v1438_v14 = vadd.f32 %v1437_v2, %v3073_v47  ;;  %v2153_v36 = vpop.eup %2152  ;;  %v1498_v55 = vadd.f32 1.0, %v2151_v56  ;;  %v1538_v2 = vmul.f32 %v3083_v45, %v3151_v51 }
 0x33a   :  { %2158 = vtanh.f32 %v1478_v54  ;;  %1797 = vmatpush.msrb.mxu1 %v2988_v30  ;;  %v1494_v42 = vadd.f32 1.0, %v2153_v36  ;;  %v1534_v30 = vmul.f32 %v3096_v4, %v3144_v26  ;;  %1974 = vmatmul.msk.f32.vlgmr.msrb.gmra.mxu0 %vm423_vm1, %v3181_v27 }
 0x33b   :  { %v2155_v17 = vpop.eup %2154  ;;  %2160 = vtanh.f32 %v3130_v12  ;;  %v1479_v31 = vmul.f32 0.5, %v1438_v14  ;;  %v1510_v59 = vmul.f32 0.5, %v1498_v55  ;;  %v1554_v63 = vmax.f32 %v1438_v14, 0.0 }
 0x33c   :  { %2162 = vtanh.f32 %v3144_v26  ;;  %v2157_v47 = vpop.eup %2156  ;;  %v1499_v57 = vadd.f32 1.0, %v2155_v17  ;;  %v1580_v12 = vmul.f32 %v3081_v32, %v1553_v19  ;;  %v1506_v61 = vmul.f32 0.5, %v1494_v42 }
 0x33d   :  { %2164 = vtanh.f32 %v1479_v31  ;;  %v1495_v23 = vadd.f32 1.0, %v2157_v47  ;;  %1975 = vmatmul.msk.f32.vlgmr.msrb.gmra.mxu1 %vm423_vm1, %v3181_v27  ;;  %v1537_v26 = vmul.f32 %v3083_v45, %v3138_v46  ;;  %v1615_v0 = vmul.f32 %v3102_v10, %v1510_v59 }
 0x33e   :  { %2166 = vtanh.f32 %v1412_v16  ;;  %v1511_v15 = vmul.f32 0.5, %v1499_v57  ;;  %v1581_v53 = vmul.f32 %v3081_v32, %v1554_v63  ;;  %v1592_v20 = vadd.f32 %v1580_v12, %v1541_v40  ;;  %v2177_v40 = vld [vmem:[%s3260_s0 + $0x18] sm:$0xff] }
 0x33f   :  { %2168 = vtanh.f32 %v3138_v46  ;;  %v1507_v46 = vmul.f32 0.5, %v1495_v23  ;;  %v1588_v29 = vadd.f32 %v1576_v13, %v1537_v26  ;;  %v1611_v54 = vmul.f32 %v3119_v43, %v1506_v61 }
 0x340   :  { %v2159_v9 = vpop.eup %2158  ;;  %2170 = vtanh.f32 %v1438_v14  ;;  %v1542_v36 = vmul.f32 %v3079_v25, %v1438_v14  ;;  %v1616_v17 = vmul.f32 %v3102_v10, %v1511_v15  ;;  %v1589_v42 = vadd.f32 %v1577_v22, %v1538_v2 }
 0x341   :  { %v2161_v62 = vpop.eup %2160  ;;  %v1502_v7 = vadd.f32 1.0, %v2159_v9  ;;  %2172 = vtanh.f32 %v3151_v51  ;;  %v1627_v55 = vadd.f32 %v1615_v0, %v1588_v29  ;;  %v1612_v34 = vmul.f32 %v3119_v43, %v1507_v46 }
 0x342   :  { %v2163_v4 = vpop.eup %2162  ;;  %v1593_v47 = vadd.f32 %v1581_v53, %v1542_v36  ;;  %v1623_v51 = vadd.f32 %v1611_v54, %v1584_v37  ;;  %v1628_v14 = vadd.f32 %v1616_v17, %v1589_v42  ;;  %v1585_v59 = vadd.f32 %v1573_v44, %v1534_v30  ;;  %v2176_v44 = vld [vmem:[%s3260_s0 + $0x10] sm:$0xff] }
 0x343   :  { %v2165_v5 = vpop.eup %2164  ;;  %v1514_v48 = vmul.f32 0.5, %v1502_v7  ;;  %v1650_v41 = vmul.f32 %v2161_v62, %v3141_v38  ;;  %v1651_v23 = vmul.f32 %v2163_v4, %v3141_v38 }
 0x344   :  { %v2167_v58 = vpop.eup %2166  ;;  %v1503_v24 = vadd.f32 1.0, %v2165_v5  ;;  %v1624_v63 = vadd.f32 %v1612_v34, %v1585_v59 }
 0x345   :  { %v2169_v33 = vpop.eup %2168  ;;  %v1619_v56 = vmul.f32 %v3094_v50, %v1514_v48  ;;  %v1658_v60 = vmul.f32 %v2167_v58, %v3108_v35  ;;  %v1662_v43 = vadd.f32 %v1650_v41, %v1623_v51 }
 0x346   :  { %v1515_v16 = vmul.f32 0.5, %v1503_v24  ;;  %v2171_v31 = vpop.eup %2170  ;;  %v1654_v45 = vmul.f32 %v2169_v33, %v3133_v3  ;;  %v1663_v7 = vadd.f32 %v1651_v23, %v1624_v63 }
 0x347   :  { %v1631_v32 = vadd.f32 %v1619_v56, %v1592_v20  ;;  %v2173_v52 = vpop.eup %2172  ;;  %v1659_v10 = vmul.f32 %v2171_v31, %v3108_v35 }
 0x348   :  { %v1620_v19 = vmul.f32 %v3094_v50, %v1515_v16  ;;  %v1666_v9 = vadd.f32 %v1654_v45, %v1627_v55  ;;  %v1655_v50 = vmul.f32 %v2173_v52, %v3133_v3 }
 0x349   :  { %v1670_v57 = vadd.f32 %v1658_v60, %v1631_v32 }
 0x34a   :  { %v1632_v25 = vadd.f32 %v1620_v19, %v1593_v47  ;;  %v1667_v13 = vadd.f32 %v1655_v50, %v1628_v14 }
 0x34b   :  { %1732 = vmatpush.msra.mxu2 %v1670_v57 }
 0x34c   :  { %v1671_v6 = vadd.f32 %v1659_v10, %v1632_v25 }
 0x34d   :  { %1733 = vmatpush.msra.mxu2 %v1666_v9 }
 0x34e   :  { %1752 = vmatpush.msra.mxu3 %v1671_v6 }
 0x34f   :  { %1734 = vmatpush.msra.mxu2 %v1662_v43 }
 0x350   :  { %1753 = vmatpush.msra.mxu3 %v1667_v13  ;;  %1972 = vmatmul.msk.f32.vlgmr.msra.gmra.mxu2 %vm423_vm1, %v3164_v21 }
 0x351   :  { %1815 = vmatpush.msrb.mxu2 %v3038_v18 }
 0x352   :  { %1754 = vmatpush.msra.mxu3 %v1663_v7 }
 0x353   :  { %1816 = vmatpush.msrb.mxu2 %v3044_v28  ;;  %1973 = vmatmul.msk.f32.vlgmr.msra.gmra.mxu3 %vm423_vm1, %v3164_v21 }
 0x354   :  { %1835 = vmatpush.msrb.mxu3 %v3047_v49 }
 0x355   :  { %1817 = vmatpush.msrb.mxu2 %v3052_v8 }
 0x356   :  { %1836 = vmatpush.msrb.mxu3 %v3055_v1  ;;  %v2174_v1 = vld [vmem:[%s3260_s0] sm:$0xff] }
 0x358   :  { %1837 = vmatpush.msrb.mxu3 %v3060_v11  ;;  %1976 = vmatmul.msk.f32.vlgmr.msrb.gmra.mxu2 %vm423_vm1, %v3181_v27  ;;  %v2175_v11 = vld [vmem:[%s3260_s0 + $0x8] sm:$0xff] }
 0x35b   :  { %1977 = vmatmul.msk.f32.vlgmr.msrb.gmra.mxu3 %vm423_vm1, %v3181_v27 }
 0x3af   :  { %v1696_v18 = vpop.f32.mrf.mxu0 }
 0x3b2   :  { %v1716_v35 = vpop.f32.mrf.mxu1 }
 0x3b7   :  { %v1779_v28 = vpop.f32.mrf.mxu0 }
 0x3b8   :  { %v1780_v3 = vadd.f32 %v1779_v28, %v1696_v18 }
 0x3ba   :  { %v1799_v49 = vpop.f32.mrf.mxu1  ;;  %v1842_v8 = vmul.f32 0.2, %v1780_v3 }
 0x3bb   :  { %v1800_v38 = vadd.f32 %v1799_v49, %v1716_v35 }
 0x3bc   :  { %v1846_v21 = vadd.f32 %v2174_v1, %v1842_v8 }
 0x3bd   :  { %v1843_v30 = vmul.f32 0.2, %v1800_v38 }
 0x3be   :  { %1850 = vst [vmem:[%s3267_s9] sm:$0xff] %v1846_v21 }
 0x3bf   :  { %v1847_v62 = vadd.f32 %v2175_v11, %v1843_v30 }
 0x3c1   :  { %1851 = vst [vmem:[%s3267_s9 + $0x8] sm:$0xff] %v1847_v62 }
 0x3d3   :  { %v1736_v27 = vpop.f32.mrf.mxu2 }
 0x3d6   :  { %v1756_v12 = vpop.f32.mrf.mxu3 }
 0x3db   :  { %v1819_v61 = vpop.f32.mrf.mxu2 }
 0x3dc   :  { %v1820_v4 = vadd.f32 %v1819_v61, %v1736_v27 }
 0x3de   :  { %v1844_v26 = vmul.f32 0.2, %v1820_v4  ;;  %v1839_v15 = vpop.f32.mrf.mxu3 }
 0x3df   :  { %v1840_v39 = vadd.f32 %v1839_v15, %v1756_v12 }
 0x3e0   :  { %v1848_v5 = vadd.f32 %v2176_v44, %v1844_v26 }
 0x3e1   :  { %v1845_v48 = vmul.f32 0.2, %v1840_v39 }
 0x3e2   :  { %1852 = vst [vmem:[%s3267_s9 + $0x10] sm:$0xff] %v1848_v5 }
 0x3e3   :  { %v1849_v0 = vadd.f32 %v2177_v40, %v1845_v48 }
 0x3e5   :  { %1853 = vst [vmem:[%s3267_s9 + $0x18] sm:$0xff] %v1849_v0 }

</bundles_post_ra>
